<compile_context>
chip_gen: v6e
topology: v6e:2x2x1
jax: 0.10.0
libtpu: 0.0.40
codegen_flags: <defaults>
</compile_context>

<pallas_src>
import jax
import jax.numpy as jnp
from jax.experimental import pallas as pl
from jax.experimental.pallas import tpu as pltpu


def _cdiv(a: int, b: int) -> int:
    return -(-a // b)


def _round_up(a: int, m: int) -> int:
    return ((a + m - 1) // m) * m


def _pack_factor(in_dim: int) -> int:
    # Pack P batch rows per MXU contraction so K = P*in_dim == 128 when possible.
    if in_dim < 128 and 128 % in_dim == 0:
        return 128 // in_dim
    return 1


def pack_params(w1, b1, w2t, b2, pack):
    """Build block-diagonal / tiled weights for the packed-batch layout.

    Built with elementwise ops only (kron/tile), so the values are bit-exact
    copies of the originals.  Ideally hoisted out of the per-call path.
    """
    eye = jnp.eye(pack, dtype=w1.dtype)
    w1bd = jnp.kron(eye, w1)              # (P*in_dim, P*h_dim), block diagonal
    b1t = jnp.tile(b1, (1, pack))         # (1, P*h_dim)
    w2bd = jnp.kron(eye, w2t.T)           # (P*h_dim, P), block diagonal
    return w1bd, b1t, w2bd, b2


def stay_mlp_kernel(x_ref, w1_ref, b1_ref, w2_ref, b2_ref, o_ref):
    # x:  [TBR, P*in_dim]   (P consecutive batch rows packed per row)
    # w1: [P*in_dim, P*h_dim]  block-diagonal replication of (in_dim, h_dim)
    # b1: [1, P*h_dim]         b1 tiled P times
    # w2: [P*h_dim, P]         block-diagonal replication of (h_dim, 1)
    # b2: [1, 1]
    # o:  [TBR, P]             o[r, p] = MLP(x[r*P + p, :])
    h = jnp.dot(x_ref[...], w1_ref[...],
                precision=jax.lax.Precision.HIGHEST,
                preferred_element_type=jnp.float32)
    h = jnp.maximum(h + b1_ref[...], 0.0)

    # Dropout(0.2): identity at inference time.

    out = jnp.dot(h, w2_ref[...],
                  precision=jax.lax.Precision.HIGHEST,
                  preferred_element_type=jnp.float32)
    o_ref[...] = (out + b2_ref[...]).astype(o_ref.dtype)


def stay_mlp(x, w1, b1, w2t, b2, *, tb_max=65536):
    B, in_dim = x.shape
    h_dim = w1.shape[1]
    assert w1.shape == (in_dim, h_dim)
    assert b1.shape == (1, h_dim)
    assert w2t.shape == (1, h_dim)
    assert b2.shape == (1, 1)

    P = _pack_factor(in_dim)
    w1bd, b1t, w2bd, b2 = pack_params(w1, b1, w2t, b2, P)

    # ---- tile selection in packed-row units (P batch rows per packed row) ----
    R = _cdiv(B, P)                       # packed rows needed
    tbr_max = max(8, tb_max // P)         # packed rows per tile cap
    num_tiles = _cdiv(R, tbr_max)
    # v7x megacore: prefer an even number (>=2) of tiles so both TCs get work.
    if num_tiles == 1 and R >= 16:
        num_tiles = 2
    elif num_tiles > 1 and num_tiles % 2 == 1:
        num_tiles += 1
    TBR = _round_up(_cdiv(R, num_tiles), 8)   # sublane-aligned packed rows/tile
    R_pad = TBR * num_tiles
    B_pad = R_pad * P

    if B_pad != B:                        # minimal padding; skipped when aligned
        x = jnp.pad(x, ((0, B_pad - B), (0, 0)))
    x_packed = x.reshape(R_pad, P * in_dim)   # free row-major reshape

    flops = 2 * R_pad * (P * in_dim) * (P * h_dim) + 2 * R_pad * (P * h_dim) * P
    bytes_accessed = 4 * (R_pad * P * in_dim + R_pad * P
                          + (P * in_dim) * (P * h_dim) + P * h_dim
                          + (P * h_dim) * P + 1)
    cost = pl.CostEstimate(flops=flops, transcendentals=0,
                           bytes_accessed=bytes_accessed)

    out2 = pl.pallas_call(
        stay_mlp_kernel,
        out_shape=jax.ShapeDtypeStruct((R_pad, P), x.dtype),
        grid=(num_tiles,),
        in_specs=[
            pl.BlockSpec((TBR, P * in_dim), lambda i: (i, 0)),        # x (pipelined)
            pl.BlockSpec((P * in_dim, P * h_dim), lambda i: (0, 0)),  # W1 blockdiag
            pl.BlockSpec((1, P * h_dim), lambda i: (0, 0)),           # b1 tiled
            pl.BlockSpec((P * h_dim, P), lambda i: (0, 0)),           # W2 blockdiag
            pl.BlockSpec((1, 1), lambda i: (0, 0)),                   # b2
        ],
        out_specs=pl.BlockSpec((TBR, P), lambda i: (i, 0)),
        compiler_params=pltpu.CompilerParams(
            dimension_semantics=("parallel",),        # v7x: split tiles over 2 TCs
            vmem_limit_bytes=48 * 1024 * 1024,        # <= v7x 64 MiB physical VMEM
        ),
        cost_estimate=cost,
    )(x_packed, w1bd, b1t, w2bd, b2)

    # (R_pad, P) row-major == batch order; tiny wrapper-side reshape + slice.
    return out2.reshape(B_pad, 1)[:B]


def init_params(key, in_dim, h_dim):
    # PyTorch Linear default init: U(-1/sqrt(fan_in), 1/sqrt(fan_in)).
    # w1 stored pre-transposed [in_dim, h_dim]; w2 stored as a row [1, h_dim]
    # (logically w2^T).
    k1, k2, k3, k4 = jax.random.split(key, 4)
    bound1 = 1.0 / jnp.sqrt(in_dim)
    bound2 = 1.0 / jnp.sqrt(h_dim)
    w1 = jax.random.uniform(k1, (in_dim, h_dim), jnp.float32, -bound1, bound1)
    b1 = jax.random.uniform(k2, (1, h_dim), jnp.float32, -bound1, bound1)
    w2t = jax.random.uniform(k3, (1, h_dim), jnp.float32, -bound2, bound2)
    b2 = jax.random.uniform(k4, (1, 1), jnp.float32, -bound2, bound2)
    return w1, b1, w2t, b2


def stay_mlp_ref(x, w1, b1, w2t, b2):
    # Reference pinned to the same fp32 contraction precision as the kernel.
    h = jnp.maximum(
        jnp.dot(x, w1, precision=jax.lax.Precision.HIGHEST) + b1, 0.0)
    return jnp.dot(h, w2t.T, precision=jax.lax.Precision.HIGHEST) + b2


if __name__ == "__main__":
    in_dim, h_dim = 16, 64
    key = jax.random.PRNGKey(0)
    kp, kx1, kx2 = jax.random.split(key, 3)
    w1, b1, w2t, b2 = init_params(kp, in_dim, h_dim)

    # B=8: single-tile path.  B=300: padding + 2-tile "parallel" path.
    for B, kx in ((8, kx1), (300, kx2)):
        x = jax.random.normal(kx, (B, in_dim), jnp.float32)
        out = jax.block_until_ready(stay_mlp(x, w1, b1, w2t, b2))
        ref = stay_mlp_ref(x, w1, b1, w2t, b2)
        assert out.shape == (B, 1)
        max_err = float(jnp.max(jnp.abs(out - ref)))
        assert jnp.allclose(out, ref, atol=1e-5, rtol=1e-5), (B, max_err)

    print("KERNEL_OK")
</pallas_src>

<mosaic_0001>
module attributes {stable_mosaic.version = 11 : i64} {
  func.func @stay_mlp_kernel(%arg0: i32, %arg1: memref<8x128xf32, #tpu.memory_space<vmem>>, %arg2: memref<128x512xf32, #tpu.memory_space<vmem>>, %arg3: memref<1x512xf32, #tpu.memory_space<vmem>>, %arg4: memref<512x8xf32, #tpu.memory_space<vmem>>, %arg5: memref<1x1xf32, #tpu.memory_space<vmem>>, %arg6: memref<8x8xf32, #tpu.memory_space<vmem>>) attributes {dimension_semantics = [#tpu.dimension_semantics<parallel>], iteration_bounds = array<i64: 1>, scalar_prefetch = 0 : i64, scratch_operands = 0 : i64, tpu.core_type = #tpu.core_type<tc>, window_params = [{transform_indices = @transform_0, window_bounds = array<i64: 8, 128>}, {pipeline_mode = #tpu.pipeline_mode<synchronous>, transform_indices = @transform_1, window_bounds = array<i64: 128, 512>}, {pipeline_mode = #tpu.pipeline_mode<synchronous>, transform_indices = @transform_2, window_bounds = array<i64: 1, 512>}, {pipeline_mode = #tpu.pipeline_mode<synchronous>, transform_indices = @transform_3, window_bounds = array<i64: 512, 8>}, {pipeline_mode = #tpu.pipeline_mode<synchronous>, transform_indices = @transform_4, window_bounds = array<i64: 1, 1>}, {transform_indices = @transform_5, window_bounds = array<i64: 8, 8>}]} {
    %c0 = arith.constant 0 : index
    %c0_0 = arith.constant 0 : index
    %0 = vector.load %arg1[%c0, %c0_0] : memref<8x128xf32, #tpu.memory_space<vmem>>, vector<8x128xf32>
    %c0_1 = arith.constant 0 : index
    %c0_2 = arith.constant 0 : index
    %1 = vector.load %arg2[%c0_1, %c0_2] : memref<128x512xf32, #tpu.memory_space<vmem>>, vector<128x512xf32>
    %cst = arith.constant dense<0.000000e+00> : vector<8x512xf32>
    %2 = tpu.matmul %0, %1, %cst {dimension_numbers = #tpu.dot_dimension_numbers<[1], [0], [0], [1], [0, 0, 1, 1], [], []>, precision = #tpu.contract_precision<fp32>} : vector<8x128xf32>, vector<128x512xf32>, vector<8x512xf32> -> vector<8x512xf32>
    %c0_3 = arith.constant 0 : index
    %c0_4 = arith.constant 0 : index
    %3 = vector.load %arg3[%c0_3, %c0_4] : memref<1x512xf32, #tpu.memory_space<vmem>>, vector<1x512xf32>
    %4 = vector.broadcast %3 : vector<1x512xf32> to vector<8x512xf32>
    %5 = arith.addf %2, %4 : vector<8x512xf32>
    %cst_5 = arith.constant 0.000000e+00 : f32
    %6 = vector.broadcast %cst_5 : f32 to vector<8x512xf32>
    %7 = arith.maximumf %5, %6 : vector<8x512xf32>
    %c0_6 = arith.constant 0 : index
    %c0_7 = arith.constant 0 : index
    %8 = vector.load %arg4[%c0_6, %c0_7] : memref<512x8xf32, #tpu.memory_space<vmem>>, vector<512x8xf32>
    %cst_8 = arith.constant dense<0.000000e+00> : vector<8x8xf32>
    %9 = tpu.matmul %7, %8, %cst_8 {dimension_numbers = #tpu.dot_dimension_numbers<[1], [0], [0], [1], [0, 0, 1, 1], [], []>, precision = #tpu.contract_precision<fp32>} : vector<8x512xf32>, vector<512x8xf32>, vector<8x8xf32> -> vector<8x8xf32>
    %c0_9 = arith.constant 0 : index
    %c0_10 = arith.constant 0 : index
    %10 = vector.load %arg5[%c0_9, %c0_10] : memref<1x1xf32, #tpu.memory_space<vmem>>, vector<1x1xf32>
    %11 = vector.broadcast %10 : vector<1x1xf32> to vector<8x8xf32>
    %12 = arith.addf %9, %11 : vector<8x8xf32>
    %c0_11 = arith.constant 0 : index
    %c0_12 = arith.constant 0 : index
    %13 = vector.load %arg6[%c0_11, %c0_12] : memref<8x8xf32, #tpu.memory_space<vmem>>, vector<8x8xf32>
    tpu.vector_store %arg6[%c0_11, %c0_12], %12 {strides = array<i32>} : memref<8x8xf32, #tpu.memory_space<vmem>>, vector<8x8xf32>,
    return
  }
  func.func @transform_0(%arg0: i32) -> (i32, i32) {
    %c0_i32 = arith.constant 0 : i32
    %c0_i32_0 = arith.constant 0 : i32
    return %arg0, %c0_i32 : i32, i32
  }
  func.func @transform_1(%arg0: i32) -> (i32, i32) {
    %c0_i32 = arith.constant 0 : i32
    %c0_i32_0 = arith.constant 0 : i32
    %c0_i32_1 = arith.constant 0 : i32
    return %c0_i32, %c0_i32_0 : i32, i32
  }
  func.func @transform_2(%arg0: i32) -> (i32, i32) {
    %c0_i32 = arith.constant 0 : i32
    %c0_i32_0 = arith.constant 0 : i32
    %c0_i32_1 = arith.constant 0 : i32
    return %c0_i32, %c0_i32_0 : i32, i32
  }
  func.func @transform_3(%arg0: i32) -> (i32, i32) {
    %c0_i32 = arith.constant 0 : i32
    %c0_i32_0 = arith.constant 0 : i32
    %c0_i32_1 = arith.constant 0 : i32
    return %c0_i32, %c0_i32_0 : i32, i32
  }
  func.func @transform_4(%arg0: i32) -> (i32, i32) {
    %c0_i32 = arith.constant 0 : i32
    %c0_i32_0 = arith.constant 0 : i32
    %c0_i32_1 = arith.constant 0 : i32
    return %c0_i32, %c0_i32_0 : i32, i32
  }
  func.func @transform_5(%arg0: i32) -> (i32, i32) {
    %c0_i32 = arith.constant 0 : i32
    %c0_i32_0 = arith.constant 0 : i32
    return %arg0, %c0_i32 : i32, i32
  }
}

</mosaic_0001>

<bundles_post_ra>
// kernel: tpu_custom_call.1
= control target key start
LH: loop header
LB: loop body
LE: loop exit
PB: predicated region body
PF: predicated region fallthrough
CT: control target
= control target key end

     0   :  { %s6775_s0 = inlined_call_operand.vmem [shape: f32[8,128], index: 0, kind: input, shape index: {}]   ;;  %s6776_s1 = inlined_call_operand.vmem [shape: f32[128,512], index: 1, kind: input, shape index: {}]   ;;  %s6777_s2 = inlined_call_operand.vmem [shape: f32[1,512], index: 2, kind: input, shape index: {}]   ;;  %s6778_s3 = inlined_call_operand.vmem [shape: f32[512,8], index: 3, kind: input, shape index: {}]   ;;  %s6779_s4 = inlined_call_operand.<no memory space> [shape: f32[1,1], index: 4, kind: input, shape index: {}]   ;;  %s6780_s5 = inlined_call_operand.hbm [shape: f32[8,8], index: 5, kind: output, shape index: {}]  }
   0x1   :  { %v10_v0 = vstv %s6779_s4 }
   0x2   :  { %11 = vst [vmem:[#allocation2] sm:$0x1] %v10_v0 }
   0x3   :  { %v85_v1 = vld [vmem:[%s6776_s1 + $0x1e8] sm:$0xff]  ;;  %v84_v2 = vld [vmem:[%s6776_s1 + $0x1e0] sm:$0xff]  ;;  %v6795_v10 = vmov 0.0  }
   0x4   :  { %v81_v3 = vld [vmem:[%s6776_s1 + $0x1c8] sm:$0xff]  ;;  %v4130_v4 = vand.u32 4294901760, %v85_v1  ;;  %v4132_v5 = vand.u32 4294901760, %v84_v2  ;;  %v80_v7 = vld [vmem:[%s6776_s1 + $0x1c0] sm:$0xff]  ;;  %206 = vmatprep.mubr.f32.mxu0 %v6795_v10  ;;  %442 = vmatprep.mubr.f32.mxu1 %v6795_v10 }
   0x5   :  { %v4134_v6 = vand.u32 4294901760, %v81_v3  ;;  %v77_v8 = vld [vmem:[%s6776_s1 + $0x1a8] sm:$0xff]  ;;  %v76_v9 = vld [vmem:[%s6776_s1 + $0x1a0] sm:$0xff]  ;;  %v4147_v11 = vand.u32 4294901760, %v80_v7 }
   0x6   :  { %v4149_v12 = vand.u32 4294901760, %v77_v8  ;;  %v4151_v13 = vand.u32 4294901760, %v76_v9  ;;  %v73_v14 = vld [vmem:[%s6776_s1 + $0x188] sm:$0xff]  ;;  %v72_v15 = vld [vmem:[%s6776_s1 + $0x180] sm:$0xff]  ;;  %111 = vmatprep.subr.mxu0 %v4130_v4  ;;  %v4170_v20 = vsub.f32 %v85_v1, %v4130_v4  ;;  %v4192_v25 = vsub.f32 %v84_v2, %v4132_v5 }
   0x7   :  { %v69_v16 = vld [vmem:[%s6776_s1 + $0x168] sm:$0xff]  ;;  %v4163_v17 = vand.u32 4294901760, %v73_v14  ;;  %v4165_v18 = vand.u32 4294901760, %v72_v15  ;;  %v4175_v21 = vld [vmem:[%s6776_s1 + $0x160] sm:$0xff]  ;;  %113 = vmatpush1.msra.mxu0 %v4132_v5  ;;  %v4198_v27 = vsub.f32 %v81_v3, %v4134_v6  ;;  %v4221_v33 = vsub.f32 %v80_v7, %v4147_v11 }
   0x8   :  { %v4167_v19 = vand.u32 4294901760, %v69_v16  ;;  %v4180_v22 = vld [vmem:[%s6776_s1 + $0x148] sm:$0xff]  ;;  %v4185_v23 = vld [vmem:[%s6776_s1 + $0x140] sm:$0xff]  ;;  %v4189_v24 = vand.u32 4294901760, %v4175_v21  ;;  %115 = vmatprep.subr.mxu0 %v4134_v6  ;;  %v6794_v31 = vand.u32 4294901760, %v4170_v20  ;;  %v6792_v35 = vand.u32 4294901760, %v4192_v25 }
   0x9   :  { %v4195_v26 = vand.u32 4294901760, %v4180_v22  ;;  %v4203_v28 = vld [vmem:[%s6776_s1 + $0x128] sm:$0xff]  ;;  %v4208_v29 = vld [vmem:[%s6776_s1 + $0x120] sm:$0xff]  ;;  %v4218_v32 = vand.u32 4294901760, %v4185_v23  ;;  %117 = vmatpush1.msra.mxu0 %v4147_v11  ;;  %v6791_v36 = vand.u32 4294901760, %v4198_v27  ;;  %v4230_v37 = vsub.f32 %v77_v8, %v4149_v12 }
   0xa   :  { %v4213_v30 = vld [vmem:[%s6776_s1 + $0x108] sm:$0xff]  ;;  %v4224_v34 = vand.u32 4294901760, %v4203_v28  ;;  %v4233_v38 = vand.u32 4294901760, %v4208_v29  ;;  %v4238_v39 = vld [vmem:[%s6776_s1 + $0x100] sm:$0xff]  ;;  %119 = vmatprep.subr.mxu0 %v4149_v12  ;;  %v221_v40 = vsub.f32 %v4170_v20, %v6794_v31  ;;  %v6789_v41 = vand.u32 4294901760, %v4221_v33 }
   0xb   :  { %v4246_v42 = vsub.f32 %v76_v9, %v4151_v13  ;;  %v4249_v43 = vand.u32 4294901760, %v4213_v30  ;;  %121 = vmatpush1.msra.mxu0 %v4151_v13  ;;  %v227_v44 = vsub.f32 %v4192_v25, %v6792_v35  ;;  %v233_v45 = vsub.f32 %v4198_v27, %v6791_v36  ;;  %v4265_v48 = vld [vmem:[%s6776_s1 + $0xe8] sm:$0xff]  ;;  %v4278_v53 = vld [vmem:[%s6776_s1 + $0xe0] sm:$0xff] }
   0xc   :  { %7039 = vst [vmem:[#allocation6_spill] sm:$0xff] %v4224_v34  ;;  %7040 = vst [vmem:[#allocation7_spill] sm:$0xff] %v4233_v38  ;;  %v6787_v46 = vand.u32 4294901760, %v4230_v37  ;;  %v4260_v47 = vsub.f32 %v73_v14, %v4163_v17  ;;  %123 = vmatprep.subr.mxu0 %v4163_v17  ;;  %v222_v49 = vand.u32 4294901760, %v221_v40  ;;  %v239_v50 = vsub.f32 %v4221_v33, %v6789_v41  ;;  %v4288_v58 = vld [vmem:[%s6776_s1 + $0xc8] sm:$0xff]  ;;  %v4303_v63 = vld [vmem:[%s6776_s1 + $0xc0] sm:$0xff] }
   0xd   :  { %7041 = vst [vmem:[#allocation8_spill] sm:$0xff] %v4249_v43  ;;  %v6786_v51 = vand.u32 4294901760, %v4246_v42  ;;  %v4273_v52 = vand.u32 4294901760, %v4238_v39  ;;  %125 = vmatpush1.msra.mxu0 %v4165_v18  ;;  %v228_v54 = vand.u32 4294901760, %v227_v44  ;;  %v234_v55 = vand.u32 4294901760, %v233_v45  ;;  %v4318_v7 = vld [vmem:[%s6776_s1 + $0xa8] sm:$0xff] }
   0xe   :  { %v245_v56 = vsub.f32 %v4230_v37, %v6787_v46  ;;  %v6784_v57 = vand.u32 4294901760, %v4260_v47  ;;  %127 = vmatprep.subr.mxu0 %v4167_v19  ;;  %223 = vmatprep.subr.mxu1 %v222_v49  ;;  %v240_v59 = vand.u32 4294901760, %v239_v50  ;;  %v4295_v61 = vsub.f32 %v72_v15, %v4165_v18  ;;  %v4411_v46 = vld [vmem:[%s6776_s1 + $0x60] sm:$0xff]  ;;  %v4427_v41 = vld [vmem:[%s6776_s1 + $0x48] sm:$0xff] }
   0xf   :  { %7042 = vst [vmem:[#allocation9_spill] sm:$0xff] %v4273_v52  ;;  %v251_v60 = vsub.f32 %v4246_v42, %v6786_v51  ;;  %v4298_v62 = vand.u32 4294901760, %v4265_v48  ;;  %129 = vmatpush1.msra.mxu0 %v4189_v24  ;;  %229 = vmatpush1.msra.mxu1 %v228_v54  ;;  %v4310_v2 = vsub.f32 %v69_v16, %v4167_v19  ;;  %v4313_v3 = vand.u32 4294901760, %v4278_v53  ;;  %v4332_v16 = vld [vmem:[%s6776_s1 + $0xa0] sm:$0xff]  ;;  %v4454_v31 = vld [vmem:[%s6776_s1 + $0x28] sm:$0xff] }
  0x10   :  { %v246_v0 = vand.u32 4294901760, %v245_v56  ;;  %v257_v1 = vsub.f32 %v4260_v47, %v6784_v57  ;;  %131 = vmatprep.subr.mxu0 %v4195_v26  ;;  %235 = vmatprep.subr.mxu1 %v234_v55  ;;  %v6782_v9 = vand.u32 4294901760, %v4295_v61  ;;  %v4324_v14 = vsub.f32 %v4175_v21, %v4189_v24 }
  0x11   :  { %7043 = vst [vmem:[#allocation10_spill] sm:$0xff] %v4298_v62  ;;  %7044 = vst [vmem:[#allocation11_spill] sm:$0xff] %v4313_v3  ;;  %v252_v8 = vand.u32 4294901760, %v251_v60  ;;  %v4327_v15 = vand.u32 4294901760, %v4288_v58  ;;  %133 = vmatpush1.msra.mxu0 %v4218_v32  ;;  %241 = vmatpush1.msra.mxu1 %v240_v59  ;;  %v6781_v44 = vand.u32 4294901760, %v4310_v2  ;;  %v4338_v45 = vsub.f32 %v4180_v22, %v4195_v26  ;;  %v4358_v22 = vld [vmem:[%s6776_s1 + $0x88] sm:$0xff] }
  0x12   :  { %v258_v40 = vand.u32 4294901760, %v257_v1  ;;  %v4341_v21 = vand.u32 4294901760, %v4303_v63  ;;  %135 = vmatprep.subr.mxu0 %v4224_v34  ;;  %247 = vmatprep.subr.mxu1 %v246_v0  ;;  %v263_v49 = vsub.f32 %v4295_v61, %v6782_v9  ;;  %v6783_v50 = vand.u32 4294901760, %v4324_v14 }
  0x13   :  { %7045 = vst [vmem:[#allocation12_spill] sm:$0xff] %v4327_v15  ;;  %v4350_v54 = vsub.f32 %v4185_v23, %v4218_v32  ;;  %v4353_v55 = vand.u32 4294901760, %v4318_v7  ;;  %137 = vmatpush1.msra.mxu0 %v4233_v38  ;;  %253 = vmatpush1.msra.mxu1 %v252_v8  ;;  %v269_v56 = vsub.f32 %v4310_v2, %v6781_v44  ;;  %v6785_v59 = vand.u32 4294901760, %v4338_v45 }
  0x14   :  { %7046 = vst [vmem:[#allocation13_spill] sm:$0xff] %v4341_v21  ;;  %v4367_v23 = vsub.f32 %v4203_v28, %v4224_v34  ;;  %v4370_v60 = vand.u32 4294901760, %v4332_v16  ;;  %139 = vmatprep.subr.mxu0 %v4249_v43  ;;  %259 = vmatprep.subr.mxu1 %v258_v40  ;;  %v264_v0 = vand.u32 4294901760, %v263_v49  ;;  %v275_v1 = vsub.f32 %v4324_v14, %v6783_v50  ;;  %v4384_v28 = vld [vmem:[%s6776_s1 + $0x80] sm:$0xff] }
  0x15   :  { %7047 = vst [vmem:[#allocation14_spill] sm:$0xff] %v4353_v55  ;;  %v6788_v8 = vand.u32 4294901760, %v4350_v54  ;;  %v4379_v44 = vsub.f32 %v4208_v29, %v4233_v38  ;;  %141 = vmatpush1.msra.mxu0 %v4273_v52  ;;  %v270_v9 = vand.u32 4294901760, %v269_v56  ;;  %v281_v40 = vsub.f32 %v4338_v45, %v6785_v59  ;;  %v4397_v29 = vld [vmem:[%s6776_s1 + $0x68] sm:$0xff] }
  0x16   :  { %7048 = vst [vmem:[#allocation15_spill] sm:$0xff] %v4370_v60  ;;  %v6790_v49 = vand.u32 4294901760, %v4367_v23  ;;  %v4392_v50 = vand.u32 4294901760, %v4358_v22  ;;  %265 = vmatpush1.msra.mxu1 %v264_v0  ;;  %143 = vmatprep.subr.mxu0 %v4298_v62  ;;  %v276_v57 = vand.u32 4294901760, %v275_v1  ;;  %v4406_v51 = vsub.f32 %v4213_v30, %v4249_v43 }
  0x17   :  { %v287_v56 = vsub.f32 %v4350_v54, %v6788_v8  ;;  %v6793_v59 = vand.u32 4294901760, %v4379_v44  ;;  %271 = vmatprep.subr.mxu1 %v270_v9  ;;  %145 = vmatpush1.msra.mxu0 %v4313_v3  ;;  %v282_v0 = vand.u32 4294901760, %v281_v40  ;;  %v4418_v8 = vand.u32 4294901760, %v4384_v28 }
  0x18   :  { %7049 = vst [vmem:[#allocation16_spill] sm:$0xff] %v4392_v50  ;;  %v293_v1 = vsub.f32 %v4367_v23, %v6790_v49  ;;  %v4422_v30 = vsub.f32 %v4238_v39, %v4273_v52  ;;  %277 = vmatpush1.msra.mxu1 %v276_v57  ;;  %147 = vmatprep.subr.mxu0 %v4327_v15  ;;  %v6799_v49 = vand.u32 4294901760, %v4406_v51  ;;  %v4435_v36 = vand.u32 4294901760, %v4397_v29  ;;  %v4440_v39 = vld [vmem:[%s6776_s1 + $0x40] sm:$0xff] }
  0x19   :  { %7050 = vst [vmem:[#allocation17_spill] sm:$0xff] %v4418_v8  ;;  %v288_v9 = vand.u32 4294901760, %v287_v56  ;;  %v299_v40 = vsub.f32 %v4379_v44, %v6793_v59  ;;  %283 = vmatprep.subr.mxu1 %v282_v0  ;;  %149 = vmatpush1.msra.mxu0 %v4341_v21  ;;  %v4446_v35 = vsub.f32 %v4265_v48, %v4298_v62  ;;  %v4449_v59 = vand.u32 4294901760, %v4411_v46 }
  0x1a   :  { %7051 = vst [vmem:[#allocation18_spill] sm:$0xff] %v4435_v36  ;;  %v294_v57 = vand.u32 4294901760, %v293_v1  ;;  %v6800_v56 = vand.u32 4294901760, %v4422_v30 }
  0x1b   :  { %7052 = vst [vmem:[#allocation19_spill] sm:$0xff] %v4449_v59 }
  0x1c   :  { %12 = vsyncpa [#allocation4], 0  ;;  %289 = vmatpush1.msra.mxu1 %v288_v9  ;;  %151 = vmatprep.subr.mxu0 %v4353_v55  ;;  %v300_v0 = vand.u32 4294901760, %v299_v40  ;;  %v305_v1 = vsub.f32 %v4406_v51, %v6799_v49  ;;  %v4462_v48 = vsub.f32 %v4278_v53, %v4313_v3  ;;  %v4465_v10 = vand.u32 4294901760, %v4427_v41  ;;  %v4482_v53 = vld [vmem:[%s6776_s1 + $0x20] sm:$0xff] }
  0x1d   :  { %295 = vmatprep.subr.mxu1 %v294_v57  ;;  %153 = vmatpush1.msra.mxu0 %v4370_v60  ;;  %v311_v9 = vsub.f32 %v4422_v30, %v6800_v56  ;;  %v4474_v62 = vsub.f32 %v4288_v58, %v4327_v15  ;;  %v4477_v49 = vand.u32 4294901760, %v4440_v39  ;;  %v4488_v40 = vsub.f32 %v4303_v63, %v4341_v21  ;;  %v4496_v15 = vld [vmem:[%s6776_s1 + $0x8] sm:$0xff] }
  0x1e   :  { %7053 = vst [vmem:[#allocation20_spill] sm:$0xff] %v4465_v10  ;;  %301 = vmatpush1.msra.mxu1 %v300_v0  ;;  %155 = vmatprep.subr.mxu0 %v4392_v50  ;;  %v306_v57 = vand.u32 4294901760, %v305_v1  ;;  %v4491_v58 = vand.u32 4294901760, %v4454_v31  ;;  %v7056_v3 = vand.u32 4294901760, %v4446_v35  ;;  %v4505_v63 = vsub.f32 %v4318_v7, %v4353_v55  ;;  %v4522_v7 = vld [vmem:[%s6776_s1] sm:$0xff] }
  0x1f   :  { %7054 = vst [vmem:[#allocation21_spill] sm:$0xff] %v4477_v49  ;;  %157 = vmatpush1.msra.mxu0 %v4418_v8  ;;  %v312_v0 = vand.u32 4294901760, %v311_v9  ;;  %v6817_v56 = vand.u32 4294901760, %v4474_v62  ;;  %v7058_v21 = vand.u32 4294901760, %v4462_v48  ;;  %v4513_v9 = vand.u32 4294901760, %v4482_v53 }
  0x20   :  { %7055 = vst [vmem:[#allocation22_spill] sm:$0xff] %v4491_v58  ;;  %v317_v1 = vsub.f32 %v4446_v35, %v7056_v3  ;;  %7057 = vst [vmem:[#allocation23_spill] sm:$0xff] %v4505_v63  ;;  %307 = vmatprep.subr.mxu1 %v306_v57  ;;  %159 = vmatprep.subr.mxu0 %v4435_v36  ;;  %v4517_v3 = vsub.f32 %v4332_v16, %v4370_v60  ;;  %v4530_v55 = vand.u32 4294901760, %v4496_v15  ;;  %vm3622_vm0 = vcmask 64512  }
  0x21   :  { %v323_v52 = vsub.f32 %v4462_v48, %v7058_v21  ;;  %313 = vmatpush1.msra.mxu1 %v312_v0  ;;  %161 = vmatpush1.msra.mxu0 %v4449_v59  ;;  %v329_v21 = vsub.f32 %v4474_v62, %v6817_v56  ;;  %v7059_v60 = vand.u32 4294901760, %v4488_v40  ;;  %v23_v56 = vld [vmem:[%s6775_s0] sm:$0xff]  ;;  %v4553_v0 = vsub.f32 %v4384_v28, %v4418_v8 }
  0x22   :  { %v318_v57 = vand.u32 4294901760, %v317_v1  ;;  %163 = vmatprep.subr.mxu0 %v4465_v10  ;;  %v4539_v1 = vsub.f32 %v4358_v22, %v4392_v50 }
  0x23   :  { %v324_v16 = vand.u32 4294901760, %v323_v52  ;;  %v335_v38 = vsub.f32 %v4488_v40, %v7059_v60  ;;  %v330_v43 = vand.u32 4294901760, %v329_v21  ;;  %165 = vmatpush1.msra.mxu0 %v4477_v49  ;;  %v7060_v52 = vand.u32 4294901760, %v4505_v63 }
  0x24   :  { %319 = vmatprep.subr.mxu1 %v318_v57  ;;  %v4549_v60 = vand.u32 4294901760, %v4522_v7  ;;  %167 = vmatprep.subr.mxu0 %v4491_v58  ;;  %v7061_v57 = vand.u32 4294901760, %v4517_v3  ;;  %v6824_v50 = vand.u32 4294901760, %v4539_v1  ;;  %v6827_v28 = vand.u32 4294901760, %v4553_v0 }
  0x25   :  { %v341_v34 = vsub.f32 %v4505_v63, %v7060_v52  ;;  %325 = vmatpush1.msra.mxu1 %v324_v16  ;;  %v336_v22 = vand.u32 4294901760, %v335_v38  ;;  %v4562_v52 = vsub.f32 %v4397_v29, %v4435_v36  ;;  %169 = vmatpush1.msra.mxu0 %v4513_v9  ;;  %v4566_v16 = vand.u32 4294901760, %v23_v56 }
  0x26   :  { %v347_v21 = vsub.f32 %v4517_v3, %v7061_v57  ;;  %331 = vmatprep.subr.mxu1 %v330_v43  ;;  %v4570_v38 = vsub.f32 %v4411_v46, %v4449_v59  ;;  %171 = vmatprep.subr.mxu0 %v4530_v55  ;;  %v353_v29 = vsub.f32 %v4539_v1, %v6824_v50 }
  0x27   :  { %v342_v63 = vand.u32 4294901760, %v341_v34  ;;  %7062 = vst [vmem:[#allocation24_spill] sm:$0xff] %v4566_v16  ;;  %337 = vmatpush1.msra.mxu1 %v336_v22  ;;  %v4579_v43 = vsub.f32 %v4427_v41, %v4465_v10  ;;  %173 = vmatpush1.msra.mxu0 %v4549_v60  ;;  %v359_v46 = vsub.f32 %v4553_v0, %v6827_v28  ;;  %v7064_v41 = vand.u32 4294901760, %v4562_v52 }
  0x28   :  { %v348_v57 = vand.u32 4294901760, %v347_v21  ;;  %v4586_v22 = vsub.f32 %v23_v56, %v4566_v16  ;;  %v4591_v50 = vsub.f32 %v4440_v39, %v4477_v49  ;;  %v354_v34 = vand.u32 4294901760, %v353_v29  ;;  %452 = vmatprep.subr.mxu0 %v4170_v20 }
  0x29   :  { %343 = vmatprep.subr.mxu1 %v342_v63  ;;  %v365_v63 = vsub.f32 %v4562_v52, %v7064_v41  ;;  %v6834_v10 = vand.u32 4294901760, %v4579_v43  ;;  %v4600_v56 = vsub.f32 %v4454_v31, %v4491_v58  ;;  %v360_v28 = vand.u32 4294901760, %v359_v46 }
  0x2a   :  { %7063 = vst [vmem:[#allocation25_spill] sm:$0xff] %v4586_v22  ;;  %349 = vmatpush1.msra.mxu1 %v348_v57  ;;  %v4603_v21 = vand.u32 4294901760, %v4586_v22  ;;  %v7066_v39 = vand.u32 4294901760, %v4570_v38  ;;  %v6835_v29 = vand.u32 4294901760, %v4591_v50  ;;  %v4615_v31 = vsub.f32 %v4482_v53, %v4513_v9 }
  0x2b   :  { %355 = vmatprep.subr.mxu1 %v354_v34  ;;  %v366_v41 = vand.u32 4294901760, %v365_v63  ;;  %v377_v49 = vsub.f32 %v4579_v43, %v6834_v10  ;;  %v6841_v59 = vand.u32 4294901760, %v4600_v56  ;;  %v4624_v63 = vsub.f32 %v4496_v15, %v4530_v55 }
  0x2c   :  { %7065 = vst [vmem:[#allocation26_spill] sm:$0xff] %v4603_v21  ;;  %v371_v57 = vsub.f32 %v4570_v38, %v7066_v39  ;;  %7067 = vst [vmem:[#allocation27_spill] sm:$0xff] %v4615_v31  ;;  %361 = vmatpush1.msra.mxu1 %v360_v28  ;;  %v210_v46 = vsub.f32 %v4586_v22, %v4603_v21  ;;  %v383_v34 = vsub.f32 %v4591_v50, %v6835_v29 }
  0x2d   :  { %367 = vmatprep.subr.mxu1 %v366_v41  ;;  %v378_v39 = vand.u32 4294901760, %v377_v49  ;;  %v389_v53 = vsub.f32 %v4600_v56, %v6841_v59  ;;  %v6840_v28 = vand.u32 4294901760, %v4615_v31  ;;  %v4632_v10 = vsub.f32 %v4522_v7, %v4549_v60  ;;  %v7082_v59 = vld [vmem:[#allocation16_spill] sm:$0xff] }
  0x2e   :  { %v372_v58 = vand.u32 4294901760, %v371_v57  ;;  %v4634_v57 = vand.u32 4294901760, %v210_v46  ;;  %v384_v29 = vand.u32 4294901760, %v383_v34  ;;  %v6839_v21 = vand.u32 4294901760, %v4624_v63 }
  0x2f   :  { %7068 = vst [vmem:[#allocation28_spill] sm:$0xff] %v4632_v10  ;;  %v390_v15 = vand.u32 4294901760, %v389_v53  ;;  %v395_v49 = vsub.f32 %v4615_v31, %v6840_v28  ;;  %v6838_v41 = vand.u32 4294901760, %v4632_v10  ;;  %v7071_v53 = vld [vmem:[#allocation6_spill] sm:$0xff]  ;;  %v7081_v28 = vld [vmem:[#allocation15_spill] sm:$0xff] }
  0x30   :  { %7069 = vst [vmem:[#allocation29_spill] sm:$0xff] %v4634_v57  ;;  %373 = vmatpush1.msra.mxu1 %v372_v58  ;;  %212 = vmatmul.mubr.f32.vlgmr.msra.gmra.mxu0 %v4634_v57  ;;  %v401_v7 = vsub.f32 %v4624_v63, %v6839_v21  ;;  %v7080_v21 = vld [vmem:[#allocation14_spill] sm:$0xff]  ;;  %v7083_v57 = vand.u32 4294901760, %v4170_v20  ;;  %v7091_v20 = vand.u32 4294901760, %v4230_v37 }
  0x31   :  { %379 = vmatprep.subr.mxu1 %v378_v39  ;;  %455 = vmatpush1.msra.mxu0 %v4192_v25  ;;  %v396_v58 = vand.u32 4294901760, %v395_v49  ;;  %v407_v46 = vsub.f32 %v4632_v10, %v6838_v41  ;;  %v7070_v39 = vmov 0.0   ;;  %v7073_v49 = vld [vmem:[#allocation7_spill] sm:$0xff]  ;;  %v7079_v41 = vld [vmem:[#allocation13_spill] sm:$0xff] }
  0x32   :  { %385 = vmatpush1.msra.mxu1 %v384_v29  ;;  %458 = vmatprep.subr.mxu0 %v4198_v27  ;;  %v402_v34 = vand.u32 4294901760, %v401_v7  ;;  %v7074_v7 = vld [vmem:[#allocation8_spill] sm:$0xff] }
  0x33   :  { %391 = vmatprep.subr.mxu1 %v390_v15  ;;  %578 = vmatprep.mubr.f32.mxu0 %v7070_v39  ;;  %v408_v29 = vand.u32 4294901760, %v407_v46  ;;  %v7072_v15 = vld [vmem:[#allocation23_spill] sm:$0xff]  ;;  %v7076_v46 = vld [vmem:[#allocation10_spill] sm:$0xff] }
  0x34   :  { %461 = vmatpush1.msra.mxu0 %v4221_v33  ;;  %397 = vmatpush1.msra.mxu1 %v396_v58  ;;  %v7075_v58 = vld [vmem:[#allocation9_spill] sm:$0xff] }
  0x35   :  { %464 = vmatprep.subr.mxu0 %v4230_v37  ;;  %403 = vmatprep.subr.mxu1 %v402_v34  ;;  %v7077_v34 = vld [vmem:[#allocation11_spill] sm:$0xff]  ;;  %v7096_v37 = vand.u32 4294901760, %v4310_v2 }
  0x36   :  { %467 = vmatpush1.msra.mxu0 %v4246_v42  ;;  %409 = vmatpush1.msra.mxu1 %v408_v29  ;;  %v7078_v29 = vld [vmem:[#allocation12_spill] sm:$0xff] }
  0x37   :  { %470 = vmatprep.subr.mxu0 %v4260_v47  ;;  %444 = vmatmul.mubr.f32.vlgmr.msra.gmra.mxu1 %v4566_v16  ;;  %v7084_v16 = vld [vmem:[#allocation19_spill] sm:$0xff] }
  0x38   :  { %473 = vmatpush1.msra.mxu0 %v4295_v61  ;;  %588 = vmatprep.subr.mxu1 %v4130_v4 }
  0x39   :  { %476 = vmatprep.subr.mxu0 %v4310_v2  ;;  %590 = vmatpush1.msra.mxu1 %v4132_v5  ;;  %v7100_v2 = vand.u32 4294901760, %v4367_v23 }
  0x3a   :  { %479 = vmatpush1.msra.mxu0 %v4324_v14  ;;  %592 = vmatprep.subr.mxu1 %v4134_v6 }
  0x3b   :  { %482 = vmatprep.subr.mxu0 %v4338_v45  ;;  %594 = vmatpush1.msra.mxu1 %v4147_v11 }
  0x3c   :  { %485 = vmatpush1.msra.mxu0 %v4350_v54  ;;  %596 = vmatprep.subr.mxu1 %v4149_v12 }
  0x3d   :  { %488 = vmatprep.subr.mxu0 %v4367_v23  ;;  %598 = vmatpush1.msra.mxu1 %v4151_v13  ;;  %v74_v23 = vld [vmem:[%s6776_s1 + $0x190] sm:$0xff] }
  0x3e   :  { %491 = vmatpush1.msra.mxu0 %v4379_v44  ;;  %600 = vmatprep.subr.mxu1 %v4163_v17 }
  0x3f   :  { %494 = vmatprep.subr.mxu0 %v4406_v51  ;;  %602 = vmatpush1.msra.mxu1 %v4165_v18 }
  0x40   :  { %497 = vmatpush1.msra.mxu0 %v4422_v30  ;;  %604 = vmatprep.subr.mxu1 %v4167_v19 }
  0x41   :  { %500 = vmatprep.subr.mxu0 %v4446_v35  ;;  %606 = vmatpush1.msra.mxu1 %v4189_v24 }
  0x42   :  { %503 = vmatpush1.msra.mxu0 %v4462_v48  ;;  %608 = vmatprep.subr.mxu1 %v4195_v26 }
  0x43   :  { %506 = vmatprep.subr.mxu0 %v4474_v62  ;;  %610 = vmatpush1.msra.mxu1 %v4218_v32 }
  0x44   :  { %509 = vmatpush1.msra.mxu0 %v4488_v40  ;;  %612 = vmatprep.subr.mxu1 %v7071_v53 }
  0x45   :  { %512 = vmatprep.subr.mxu0 %v7072_v15  ;;  %614 = vmatpush1.msra.mxu1 %v7073_v49 }
  0x46   :  { %515 = vmatpush1.msra.mxu0 %v4517_v3  ;;  %616 = vmatprep.subr.mxu1 %v7074_v7 }
  0x47   :  { %518 = vmatprep.subr.mxu0 %v4539_v1  ;;  %618 = vmatpush1.msra.mxu1 %v7075_v58 }
  0x48   :  { %521 = vmatpush1.msra.mxu0 %v4553_v0  ;;  %620 = vmatprep.subr.mxu1 %v7076_v46 }
  0x49   :  { %524 = vmatprep.subr.mxu0 %v4562_v52  ;;  %622 = vmatpush1.msra.mxu1 %v7077_v34 }
  0x4a   :  { %527 = vmatpush1.msra.mxu0 %v4570_v38  ;;  %624 = vmatprep.subr.mxu1 %v7078_v29 }
  0x4b   :  { %530 = vmatprep.subr.mxu0 %v4579_v43  ;;  %626 = vmatpush1.msra.mxu1 %v7079_v41 }
  0x4c   :  { %533 = vmatpush1.msra.mxu0 %v4591_v50  ;;  %628 = vmatprep.subr.mxu1 %v7080_v21 }
  0x4d   :  { %536 = vmatprep.subr.mxu0 %v4600_v56  ;;  %630 = vmatpush1.msra.mxu1 %v7081_v28  ;;  %v7085_v28 = vand.u32 4294901760, %v4192_v25  ;;  %v7092_v25 = vand.u32 4294901760, %v4246_v42  ;;  %v7097_v42 = vand.u32 4294901760, %v4324_v14 }
  0x4e   :  { %539 = vmatpush1.msra.mxu0 %v4615_v31  ;;  %632 = vmatprep.subr.mxu1 %v7082_v59  ;;  %v7086_v31 = vld [vmem:[#allocation20_spill] sm:$0xff]  ;;  %v7087_v59 = vand.u32 4294901760, %v4198_v27  ;;  %v7093_v27 = vand.u32 4294901760, %v4260_v47  ;;  %v7098_v47 = vand.u32 4294901760, %v4338_v45 }
  0x4f   :  { %542 = vmatprep.subr.mxu0 %v4624_v63  ;;  %634 = vmatpush1.msra.mxu1 %v4418_v8  ;;  %v7088_v8 = vld [vmem:[#allocation21_spill] sm:$0xff] }
  0x50   :  { %545 = vmatpush1.msra.mxu0 %v4632_v10  ;;  %636 = vmatprep.subr.mxu1 %v4435_v36  ;;  %v7089_v10 = vand.u32 4294901760, %v4221_v33  ;;  %v7090_v36 = vld [vmem:[#allocation22_spill] sm:$0xff] }
  0x51   :  { %581 = vmatmul.mubr.f32.vlgmr.msra.gmra.mxu0 %v4586_v22  ;;  %696 = vmatprep.subr.mxu0 %v7083_v57  ;;  %v7095_v33 = vld [vmem:[#allocation26_spill] sm:$0xff] }
  0x52   :  { %638 = vmatpush1.msra.mxu1 %v7084_v16  ;;  %700 = vmatpush1.msra.mxu0 %v7085_v28  ;;  %v7111_v28 = vand.u32 4294901760, %v4553_v0  ;;  %v70_v0 = vld [vmem:[%s6776_s1 + $0x170] sm:$0xff] }
  0x53   :  { %640 = vmatprep.subr.mxu1 %v7086_v31  ;;  %704 = vmatprep.subr.mxu0 %v7087_v59 }
  0x54   :  { %642 = vmatpush1.msra.mxu1 %v7088_v8  ;;  %708 = vmatpush1.msra.mxu0 %v7089_v10  ;;  %v7094_v10 = vand.u32 4294901760, %v4295_v61  ;;  %v7099_v61 = vand.u32 4294901760, %v4350_v54  ;;  %v7109_v54 = vand.u32 4294901760, %v4517_v3 }
  0x55   :  { %644 = vmatprep.subr.mxu1 %v7090_v36  ;;  %712 = vmatprep.subr.mxu0 %v7091_v20  ;;  %v66_v20 = vld [vmem:[%s6776_s1 + $0x150] sm:$0xff] }
  0x56   :  { %646 = vmatpush1.msra.mxu1 %v4513_v9  ;;  %716 = vmatpush1.msra.mxu0 %v7092_v25  ;;  %v67_v25 = vld [vmem:[%s6776_s1 + $0x158] sm:$0xff] }
  0x57   :  { %648 = vmatprep.subr.mxu1 %v4530_v55  ;;  %720 = vmatprep.subr.mxu0 %v7093_v27 }
  0x58   :  { %650 = vmatpush1.msra.mxu1 %v4549_v60  ;;  %683 = vmatprep.mubr.f32.mxu1 %v7070_v39 }
  0x59   :  { %724 = vmatpush1.msra.mxu0 %v7094_v10  ;;  %687 = vmatmul.mubr.f32.vlgmr.msra.gmra.mxu1 %v7095_v33 }
  0x5a   :  { %728 = vmatprep.subr.mxu0 %v7096_v37  ;;  %862 = vmatprep.subr.mxu1 %v4130_v4  ;;  %v7101_v4 = vand.u32 4294901760, %v4379_v44  ;;  %v7117_v37 = vand.u32 4294901760, %v4591_v50  ;;  %v62_v50 = vld [vmem:[%s6776_s1 + $0x130] sm:$0xff] }
  0x5b   :  { %732 = vmatpush1.msra.mxu0 %v7097_v42  ;;  %864 = vmatpush1.msra.mxu1 %v4132_v5  ;;  %v7102_v5 = vand.u32 4294901760, %v4406_v51  ;;  %v7104_v51 = vand.u32 4294901760, %v4446_v35  ;;  %v83_v35 = vld [vmem:[%s6776_s1 + $0x1d8] sm:$0xff]  ;;  %v7119_v42 = vand.u32 4294901760, %v4600_v56 }
  0x5c   :  { %736 = vmatprep.subr.mxu0 %v7098_v47  ;;  %866 = vmatprep.subr.mxu1 %v4134_v6  ;;  %v87_v6 = vld [vmem:[%s6776_s1 + $0x1f8] sm:$0xff]  ;;  %v4801_v59 = vand.u32 4294901760, %v83_v35 }
  0x5d   :  { %740 = vmatpush1.msra.mxu0 %v7099_v61  ;;  %868 = vmatpush1.msra.mxu1 %v4147_v11  ;;  %v86_v11 = vld [vmem:[%s6776_s1 + $0x1f0] sm:$0xff]  ;;  %v4771_v14 = vand.u32 4294901760, %v87_v6 }
  0x5e   :  { %744 = vmatprep.subr.mxu0 %v7100_v2  ;;  %870 = vmatprep.subr.mxu1 %v4149_v12  ;;  %v7103_v12 = vand.u32 4294901760, %v4422_v30  ;;  %v4773_v44 = vand.u32 4294901760, %v86_v11  ;;  %v4875_v2 = vand.u32 4294901760, %v66_v20 }
  0x5f   :  { %748 = vmatpush1.msra.mxu0 %v7101_v4  ;;  %872 = vmatpush1.msra.mxu1 %v4151_v13  ;;  %v82_v13 = vld [vmem:[%s6776_s1 + $0x1d0] sm:$0xff]  ;;  %v4807_v30 = vsub.f32 %v87_v6, %v4771_v14  ;;  %v4893_v6 = vand.u32 4294901760, %v67_v25 }
  0x60   :  { %752 = vmatprep.subr.mxu0 %v7102_v5  ;;  %874 = vmatprep.subr.mxu1 %v4163_v17  ;;  %v7105_v17 = vand.u32 4294901760, %v4462_v48  ;;  %v4781_v45 = vand.u32 4294901760, %v82_v13  ;;  %v7110_v48 = vand.u32 4294901760, %v4539_v1  ;;  %v7112_v1 = vand.u32 4294901760, %v4562_v52  ;;  %7121 = vst [vmem:[#allocation9_spill] sm:$0xff] %v4875_v2  ;;  %v7124_v5 = vld [vmem:[#allocation15_spill] sm:$0xff] }
  0x61   :  { %756 = vmatpush1.msra.mxu0 %v7103_v12  ;;  %876 = vmatpush1.msra.mxu1 %v4165_v18  ;;  %v7106_v18 = vand.u32 4294901760, %v4474_v62  ;;  %v7108_v62 = vand.u32 4294901760, %v7072_v15  ;;  %v4828_v15 = vand.u32 4294901760, %v74_v23  ;;  %v6855_v52 = vand.u32 4294901760, %v4807_v30  ;;  %7125 = vst [vmem:[#allocation10_spill] sm:$0xff] %v4893_v6  ;;  %v63_v12 = vld [vmem:[%s6776_s1 + $0x138] sm:$0xff] }
  0x62   :  { %760 = vmatprep.subr.mxu0 %v7104_v51  ;;  %878 = vmatprep.subr.mxu1 %v4167_v19  ;;  %v7107_v19 = vand.u32 4294901760, %v4488_v40  ;;  %v4813_v40 = vsub.f32 %v82_v13, %v4781_v45  ;;  %v7126_v13 = vand.u32 4294901760, %v4624_v63  ;;  %v7127_v51 = vld [vmem:[#allocation16_spill] sm:$0xff] }
  0x63   :  { %764 = vmatpush1.msra.mxu0 %v7105_v17  ;;  %880 = vmatpush1.msra.mxu1 %v4189_v24  ;;  %v79_v24 = vld [vmem:[%s6776_s1 + $0x1b8] sm:$0xff]  ;;  %7113 = vst [vmem:[#allocation6_spill] sm:$0xff] %v4828_v15  ;;  %v4871_v47 = vsub.f32 %v74_v23, %v4828_v15  ;;  %v7131_v23 = vld [vmem:[#allocation17_spill] sm:$0xff] }
  0x64   :  { %768 = vmatprep.subr.mxu0 %v7106_v18  ;;  %882 = vmatprep.subr.mxu1 %v4195_v26  ;;  %v78_v26 = vld [vmem:[%s6776_s1 + $0x1b0] sm:$0xff]  ;;  %v4815_v3 = vand.u32 4294901760, %v79_v24  ;;  %v6852_v27 = vand.u32 4294901760, %v4813_v40 }
  0x65   :  { %772 = vmatpush1.msra.mxu0 %v7107_v19  ;;  %884 = vmatpush1.msra.mxu1 %v4218_v32  ;;  %v4799_v32 = vsub.f32 %v86_v11, %v4773_v44  ;;  %v4820_v57 = vand.u32 4294901760, %v78_v26  ;;  %v7128_v19 = vld [vmem:[#allocation28_spill] sm:$0xff] }
  0x66   :  { %776 = vmatprep.subr.mxu0 %v7108_v62  ;;  %886 = vmatprep.subr.mxu1 %v7071_v53  ;;  %v75_v53 = vld [vmem:[%s6776_s1 + $0x198] sm:$0xff]  ;;  %v4857_v10 = vsub.f32 %v79_v24, %v4815_v3  ;;  %v4905_v17 = vsub.f32 %v4813_v40, %v6852_v27  ;;  %v7129_v24 = vand.u32 4294901760, %v7128_v19  ;;  %v4917_v62 = vand.u32 4294901760, %v62_v50 }
  0x67   :  { %780 = vmatpush1.msra.mxu0 %v7109_v54  ;;  %888 = vmatpush1.msra.mxu1 %v7073_v49  ;;  %v7114_v49 = vand.u32 4294901760, %v4570_v38  ;;  %v7115_v38 = vand.u32 4294901760, %v4579_v43  ;;  %v4863_v43 = vsub.f32 %v78_v26, %v4820_v57  ;;  %v59_v54 = vld [vmem:[%s6776_s1 + $0x118] sm:$0xff] }
  0x68   :  { %784 = vmatprep.subr.mxu0 %v7110_v48  ;;  %890 = vmatprep.subr.mxu1 %v7074_v7  ;;  %v71_v7 = vld [vmem:[%s6776_s1 + $0x178] sm:$0xff]  ;;  %v6850_v18 = vand.u32 4294901760, %v4857_v10  ;;  %7130 = vst [vmem:[#allocation11_spill] sm:$0xff] %v4917_v62 }
  0x69   :  { %788 = vmatpush1.msra.mxu0 %v7111_v28  ;;  %892 = vmatpush1.msra.mxu1 %v7075_v58  ;;  %v6854_v58 = vand.u32 4294901760, %v4799_v32  ;;  %v4873_v61 = vand.u32 4294901760, %v71_v7  ;;  %v6849_v26 = vand.u32 4294901760, %v4863_v43  ;;  %v7132_v48 = vld [vmem:[#allocation24_spill] sm:$0xff]  ;;  %v4926_v28 = vsub.f32 %v66_v20, %v4875_v2 }
  0x6a   :  { %792 = vmatprep.subr.mxu0 %v7112_v1  ;;  %894 = vmatprep.subr.mxu1 %v7076_v46  ;;  %v4842_v46 = vsub.f32 %v83_v35, %v4801_v59  ;;  %v58_v1 = vld [vmem:[%s6776_s1 + $0x110] sm:$0xff]  ;;  %v43_v20 = vld [vmem:[%s6776_s1 + $0x98] sm:$0xff] }
  0x6b   :  { %796 = vmatpush1.msra.mxu0 %v7114_v49  ;;  %896 = vmatpush1.msra.mxu1 %v7077_v34  ;;  %v4850_v34 = vand.u32 4294901760, %v75_v53  ;;  %7120 = vst [vmem:[#allocation8_spill] sm:$0xff] %v4873_v61  ;;  %v4891_v56 = vsub.f32 %v4799_v32, %v6854_v58  ;;  %v4935_v49 = vsub.f32 %v71_v7, %v4873_v61  ;;  %v4976_v19 = vand.u32 4294901760, %v58_v1 }
  0x6c   :  { %800 = vmatprep.subr.mxu0 %v7115_v38  ;;  %898 = vmatprep.subr.mxu1 %v7078_v29  ;;  %v4865_v29 = vand.u32 4294901760, %v70_v0  ;;  %v6853_v11 = vand.u32 4294901760, %v4842_v46  ;;  %v7134_v38 = vld [vmem:[#allocation18_spill] sm:$0xff]  ;;  %v4950_v7 = vsub.f32 %v67_v25, %v4893_v6 }
  0x6d   :  { %7116 = vst [vmem:[#allocation23_spill] sm:$0xff] %v4850_v34  ;;  %804 = vmatpush1.msra.mxu0 %v7117_v37  ;;  %900 = vmatpush1.msra.mxu1 %v7079_v41  ;;  %v7122_v41 = vld [vmem:[#allocation27_spill] sm:$0xff]  ;;  %v4909_v35 = vsub.f32 %v75_v53, %v4850_v34  ;;  %v4928_v53 = vand.u32 4294901760, %v63_v12  ;;  %7136 = vst [vmem:[#allocation14_spill] sm:$0xff] %v4976_v19 }
  0x6e   :  { %7118 = vst [vmem:[#allocation7_spill] sm:$0xff] %v4865_v29  ;;  %808 = vmatprep.subr.mxu0 %v7119_v42  ;;  %902 = vmatprep.subr.mxu1 %v7080_v21  ;;  %v7123_v4 = vand.u32 4294901760, %v7122_v41  ;;  %v4886_v21 = vsub.f32 %v4807_v30, %v6855_v52  ;;  %v4915_v63 = vsub.f32 %v70_v0, %v4865_v29  ;;  %v6851_v0 = vand.u32 4294901760, %v4871_v47  ;;  %v54_v41 = vld [vmem:[%s6776_s1 + $0xf0] sm:$0xff] }
  0x6f   :  { %904 = vmatpush1.msra.mxu1 %v7124_v5  ;;  %853 = vmatprep.mubr.f32.mxu0 %v7070_v39  ;;  %7133 = vst [vmem:[#allocation12_spill] sm:$0xff] %v4928_v53  ;;  %v4944_v42 = vsub.f32 %v4842_v46, %v6853_v11  ;;  %v4958_v5 = vsub.f32 %v4857_v10, %v6850_v18  ;;  %v50_v25 = vld [vmem:[%s6776_s1 + $0xd0] sm:$0xff]  ;;  %v6861_v11 = vand.u32 4294901760, %v4926_v28 }
  0x70   :  { %812 = vmatpush1.msra.mxu0 %v7123_v4  ;;  %906 = vmatprep.subr.mxu1 %v7127_v51  ;;  %v1077_v37 = vand.u32 4294901760, %v4886_v21  ;;  %v4960_v21 = vand.u32 4294901760, %v59_v54  ;;  %v4974_v51 = vsub.f32 %v4863_v43, %v6849_v26  ;;  %v51_v26 = vld [vmem:[%s6776_s1 + $0xd8] sm:$0xff]  ;;  %v4996_v18 = vsub.f32 %v63_v12, %v4928_v53  ;;  %v46_v4 = vld [vmem:[%s6776_s1 + $0xb0] sm:$0xff] }
  0x71   :  { %816 = vmatprep.subr.mxu0 %v7126_v13  ;;  %908 = vmatpush1.msra.mxu1 %v7131_v23  ;;  %v6856_v13 = vand.u32 4294901760, %v4909_v35  ;;  %v6857_v23 = vand.u32 4294901760, %v4915_v63  ;;  %v5002_v27 = vand.u32 4294901760, %v50_v25  ;;  %v1101_v58 = vand.u32 4294901760, %v4958_v5 }
  0x72   :  { %820 = vmatpush1.msra.mxu0 %v7129_v24  ;;  %910 = vmatprep.subr.mxu1 %v7134_v38  ;;  %7135 = vst [vmem:[#allocation13_spill] sm:$0xff] %v4960_v21  ;;  %v55_v24 = vld [vmem:[%s6776_s1 + $0xf8] sm:$0xff]  ;;  %v4990_v38 = vand.u32 4294901760, %v54_v41  ;;  %v5022_v52 = vsub.f32 %v58_v1, %v4976_v19 }
  0x73   :  { %855 = vmatmul.mubr.f32.vlgmr.msra.gmra.mxu0 %v7132_v48  ;;  %966 = vmatprep.subr.mxu0 %v4771_v14  ;;  %7138 = vst [vmem:[#allocation20_spill] sm:$0xff] %v5002_v27  ;;  %v5013_v12 = vand.u32 4294901760, %v55_v24  ;;  %v5027_v5 = vsub.f32 %v4915_v63, %v6857_v23  ;;  %v7144_v23 = vand.u32 4294901760, %v4891_v56  ;;  %v7147_v56 = vand.u32 4294901760, %v4996_v18 }
  0x74   :  { %912 = vmatpush1.msra.mxu1 %v7084_v16  ;;  %968 = vmatpush1.msra.mxu0 %v4773_v44  ;;  %v4969_v16 = vsub.f32 %v62_v50, %v4917_v62  ;;  %v6858_v50 = vand.u32 4294901760, %v4935_v49  ;;  %7137 = vst [vmem:[#allocation19_spill] sm:$0xff] %v4990_v38 }
  0x75   :  { %914 = vmatprep.subr.mxu1 %v7086_v31  ;;  %970 = vmatprep.subr.mxu0 %v4801_v59  ;;  %v4987_v31 = vsub.f32 %v4871_v47, %v6851_v0  ;;  %v6859_v0 = vand.u32 4294901760, %v4950_v7  ;;  %7139 = vst [vmem:[#allocation21_spill] sm:$0xff] %v5013_v12  ;;  %v5077_v22 = vsub.f32 %v55_v24, %v5013_v12  ;;  %v39_v24 = vld [vmem:[%s6776_s1 + $0x78] sm:$0xff] }
  0x76   :  { %916 = vmatpush1.msra.mxu1 %v7088_v8  ;;  %972 = vmatpush1.msra.mxu0 %v4781_v45  ;;  %v1089_v8 = vand.u32 4294901760, %v4944_v42  ;;  %v5016_v42 = vsub.f32 %v59_v54, %v4960_v21  ;;  %v47_v54 = vld [vmem:[%s6776_s1 + $0xb8] sm:$0xff]  ;;  %v5040_v1 = vsub.f32 %v4935_v49, %v6858_v50  ;;  %v5065_v50 = vsub.f32 %v4926_v28, %v6861_v11  ;;  %v38_v11 = vld [vmem:[%s6776_s1 + $0x70] sm:$0xff] }
  0x77   :  { %918 = vmatprep.subr.mxu1 %v7090_v36  ;;  %974 = vmatprep.subr.mxu0 %v4815_v3  ;;  %v5011_v36 = vsub.f32 %v4909_v35, %v6856_v13  ;;  %v5029_v13 = vand.u32 4294901760, %v51_v26  ;;  %v5073_v33 = vand.u32 4294901760, %v47_v54 }
  0x78   :  { %920 = vmatpush1.msra.mxu1 %v4513_v9  ;;  %976 = vmatpush1.msra.mxu0 %v4820_v57  ;;  %7140 = vst [vmem:[#allocation22_spill] sm:$0xff] %v5016_v42  ;;  %v1107_v9 = vand.u32 4294901760, %v4974_v51  ;;  %v5043_v51 = vsub.f32 %v54_v41, %v4990_v38  ;;  %v5060_v41 = vsub.f32 %v50_v25, %v5002_v27  ;;  %v7149_v25 = vand.u32 4294901760, %v4905_v17 }
  0x79   :  { %922 = vmatprep.subr.mxu1 %v4530_v55  ;;  %978 = vmatprep.subr.mxu0 %v4850_v34  ;;  %7141 = vst [vmem:[#allocation27_spill] sm:$0xff] %v5029_v13  ;;  %v1119_v55 = vand.u32 4294901760, %v4987_v31  ;;  %v5057_v31 = vsub.f32 %v4950_v7, %v6859_v0  ;;  %v1113_v0 = vand.u32 4294901760, %v5011_v36  ;;  %7143 = vst [vmem:[#allocation16_spill] sm:$0xff] %v5073_v33  ;;  %v7151_v17 = vand.u32 4294901760, %v5016_v42 }
  0x7a   :  { %924 = vmatpush1.msra.mxu1 %v4549_v60  ;;  %957 = vmatprep.mubr.f32.mxu1 %v7070_v39  ;;  %7142 = vst [vmem:[#allocation15_spill] sm:$0xff] %v5043_v51  ;;  %v42_v60 = vld [vmem:[%s6776_s1 + $0x90] sm:$0xff] }
  0x7b   :  { %980 = vmatpush1.msra.mxu0 %v4828_v15  ;;  %959 = vmatmul.mubr.f32.vlgmr.msra.gmra.mxu1 %v7132_v48  ;;  %v5088_v36 = vand.u32 4294901760, %v42_v60  ;;  %v5104_v15 = vsub.f32 %v51_v26, %v5029_v13  ;;  %v34_v26 = vld [vmem:[%s6776_s1 + $0x50] sm:$0xff] }
  0x7c   :  { %982 = vmatprep.subr.mxu0 %v4873_v61  ;;  %1078 = vmatprep.subr.mxu1 %v1077_v37  ;;  %v1131_v37 = vand.u32 4294901760, %v5027_v5  ;;  %v5086_v61 = vand.u32 4294901760, %v46_v4  ;;  %v5101_v5 = vand.u32 4294901760, %v43_v20 }
  0x7d   :  { %984 = vmatpush1.msra.mxu0 %v4865_v29  ;;  %1084 = vmatpush1.msra.mxu1 %v7144_v23  ;;  %7146 = vst [vmem:[#allocation17_spill] sm:$0xff] %v5088_v36  ;;  %v1125_v29 = vand.u32 4294901760, %v5040_v1  ;;  %v5099_v23 = vsub.f32 %v4996_v18, %v7147_v56  ;;  %7148 = vst [vmem:[#allocation18_spill] sm:$0xff] %v5104_v15  ;;  %v7150_v1 = vand.u32 4294901760, %v4969_v16  ;;  %v5116_v56 = vand.u32 4294901760, %v38_v11 }
  0x7e   :  { %7145 = vst [vmem:[#allocation28_spill] sm:$0xff] %v5086_v61  ;;  %986 = vmatprep.subr.mxu0 %v4893_v6  ;;  %1090 = vmatprep.subr.mxu1 %v1089_v8  ;;  %v1137_v6 = vand.u32 4294901760, %v5057_v31  ;;  %v1143_v8 = vand.u32 4294901760, %v5065_v50  ;;  %v5125_v31 = vsub.f32 %v5016_v42, %v7151_v17  ;;  %v5127_v50 = vand.u32 4294901760, %v39_v24  ;;  %v30_v42 = vld [vmem:[%s6776_s1 + $0x30] sm:$0xff] }
  0x7f   :  { %988 = vmatpush1.msra.mxu0 %v4875_v2  ;;  %1096 = vmatpush1.msra.mxu1 %v7149_v25  ;;  %v5114_v34 = vsub.f32 %v4969_v16, %v7150_v1  ;;  %v35_v1 = vld [vmem:[%s6776_s1 + $0x58] sm:$0xff]  ;;  %v5134_v2 = vsub.f32 %v47_v54, %v5073_v33  ;;  %v5141_v17 = vsub.f32 %v42_v60, %v5088_v36  ;;  %v1149_v54 = vand.u32 4294901760, %v5099_v23 }
  0x80   :  { %990 = vmatprep.subr.mxu0 %v4928_v53  ;;  %1102 = vmatprep.subr.mxu1 %v1101_v58  ;;  %v5138_v58 = vsub.f32 %v46_v4, %v5086_v61  ;;  %v7153_v53 = vand.u32 4294901760, %v5022_v52  ;;  %v31_v4 = vld [vmem:[%s6776_s1 + $0x38] sm:$0xff]  ;;  %v5156_v60 = vsub.f32 %v43_v20, %v5101_v5  ;;  %v5163_v23 = vand.u32 4294901760, %v35_v1 }
  0x81   :  { %992 = vmatpush1.msra.mxu0 %v4917_v62  ;;  %1108 = vmatpush1.msra.mxu1 %v1107_v9  ;;  %7152 = vst [vmem:[#allocation30_spill] sm:$0xff] %v5141_v17  ;;  %v5150_v9 = vand.u32 4294901760, %v34_v26  ;;  %v1161_v20 = vand.u32 4294901760, %v5125_v31  ;;  %v5179_v62 = vsub.f32 %v39_v24, %v5127_v50  ;;  %v7156_v24 = vand.u32 4294901760, %v5104_v15 }
  0x82   :  { %v1166_v25 = vsub.f32 %v5022_v52, %v7153_v53  ;;  %994 = vmatprep.subr.mxu0 %v4960_v21  ;;  %1114 = vmatprep.subr.mxu1 %v1113_v0  ;;  %v1155_v53 = vand.u32 4294901760, %v5114_v34  ;;  %v5161_v0 = vsub.f32 %v38_v11, %v5116_v56  ;;  %v5185_v21 = vand.u32 4294901760, %v31_v4  ;;  %v26_v11 = vld [vmem:[%s6776_s1 + $0x10] sm:$0xff] }
  0x83   :  { %996 = vmatpush1.msra.mxu0 %v4976_v19  ;;  %1120 = vmatpush1.msra.mxu1 %v1119_v55  ;;  %v7154_v55 = vand.u32 4294901760, %v5077_v22  ;;  %v27_v19 = vld [vmem:[%s6776_s1 + $0x18] sm:$0xff] }
  0x84   :  { %998 = vmatprep.subr.mxu0 %v5013_v12  ;;  %1126 = vmatprep.subr.mxu1 %v1125_v29  ;;  %v1167_v12 = vand.u32 4294901760, %v1166_v25  ;;  %v7155_v29 = vand.u32 4294901760, %v5043_v51  ;;  %v5196_v25 = vsub.f32 %v34_v26, %v5150_v9 }
  0x85   :  { %v1172_v34 = vsub.f32 %v5077_v22, %v7154_v55  ;;  %1000 = vmatpush1.msra.mxu0 %v4990_v38  ;;  %1132 = vmatpush1.msra.mxu1 %v1131_v37  ;;  %v1184_v37 = vsub.f32 %v5104_v15, %v7156_v24  ;;  %v5198_v38 = vand.u32 4294901760, %v30_v42  ;;  %v7158_v55 = vand.u32 4294901760, %v5060_v41 }
  0x86   :  { %v1178_v31 = vsub.f32 %v5043_v51, %v7155_v29  ;;  %1002 = vmatprep.subr.mxu0 %v5029_v13  ;;  %1138 = vmatprep.subr.mxu1 %v1137_v6  ;;  %7157 = vst [vmem:[#allocation31_spill] sm:$0xff] %v5196_v25  ;;  %v5205_v13 = vand.u32 4294901760, %v27_v19  ;;  %v5209_v24 = vsub.f32 %v35_v1, %v5163_v23  ;;  %v7159_v29 = vand.u32 4294901760, %v5134_v2 }
  0x87   :  { %1004 = vmatpush1.msra.mxu0 %v5002_v27  ;;  %1144 = vmatpush1.msra.mxu1 %v1143_v8  ;;  %v1190_v51 = vsub.f32 %v5060_v41, %v7158_v55  ;;  %v1173_v26 = vand.u32 4294901760, %v1172_v34  ;;  %v5215_v8 = vand.u32 4294901760, %v26_v11  ;;  %v7160_v6 = vand.u32 4294901760, %v5138_v58 }
  0x88   :  { %1006 = vmatprep.subr.mxu0 %v5073_v33  ;;  %1150 = vmatprep.subr.mxu1 %v1149_v54  ;;  %v1196_v27 = vsub.f32 %v5134_v2, %v7159_v29  ;;  %v1179_v55 = vand.u32 4294901760, %v1178_v31  ;;  %v5223_v33 = vsub.f32 %v31_v4, %v5185_v21  ;;  %v1185_v54 = vand.u32 4294901760, %v1184_v37 }
  0x89   :  { %1008 = vmatpush1.msra.mxu0 %v5086_v61  ;;  %1156 = vmatpush1.msra.mxu1 %v1155_v53  ;;  %v1202_v1 = vsub.f32 %v5138_v58, %v7160_v6  ;;  %v5227_v34 = vsub.f32 %v30_v42, %v5198_v38  ;;  %v7161_v29 = vand.u32 4294901760, %v5156_v60  ;;  %v1191_v31 = vand.u32 4294901760, %v1190_v51 }
  0x8a   :  { %1010 = vmatprep.subr.mxu0 %v5101_v5  ;;  %1162 = vmatprep.subr.mxu1 %v1161_v20  ;;  %v7162_v4 = vand.u32 4294901760, %v5141_v17  ;;  %v5239_v37 = vsub.f32 %v27_v19, %v5205_v13  ;;  %v1197_v42 = vand.u32 4294901760, %v1196_v27  ;;  %v7164_v53 = vand.u32 4294901760, %v5179_v62 }
  0x8b   :  { %v1208_v15 = vsub.f32 %v5156_v60, %v7161_v29  ;;  %1012 = vmatpush1.msra.mxu0 %v5088_v36  ;;  %1168 = vmatpush1.msra.mxu1 %v1167_v12  ;;  %v5243_v29 = vsub.f32 %v26_v11, %v5215_v8  ;;  %v6900_v19 = vand.u32 4294901760, %v5223_v33  ;;  %v7165_v27 = vand.u32 4294901760, %v5161_v0 }
  0x8c   :  { %v1214_v6 = vsub.f32 %v5141_v17, %v7162_v4  ;;  %1014 = vmatprep.subr.mxu0 %v5127_v50  ;;  %1174 = vmatprep.subr.mxu1 %v1173_v26  ;;  %v1220_v12 = vsub.f32 %v5179_v62, %v7164_v53  ;;  %v1203_v4 = vand.u32 4294901760, %v1202_v1  ;;  %v7166_v51 = vand.u32 4294901760, %v5209_v24 }
  0x8d   :  { %7163 = vst [vmem:[#allocation32_spill] sm:$0xff] %v5243_v29  ;;  %1016 = vmatpush1.msra.mxu0 %v5116_v56  ;;  %1180 = vmatpush1.msra.mxu1 %v1179_v55  ;;  %v1209_v26 = vand.u32 4294901760, %v1208_v15  ;;  %v1226_v11 = vsub.f32 %v5161_v0, %v7165_v27  ;;  %v6899_v1 = vand.u32 4294901760, %v5239_v37  ;;  %v6898_v20 = vand.u32 4294901760, %v5243_v29 }
  0x8e   :  { %1018 = vmatprep.subr.mxu0 %v5163_v23  ;;  %1186 = vmatprep.subr.mxu1 %v1185_v54  ;;  %v1215_v53 = vand.u32 4294901760, %v1214_v6  ;;  %v1232_v55 = vsub.f32 %v5209_v24, %v7166_v51  ;;  %v1221_v15 = vand.u32 4294901760, %v1220_v12  ;;  %v7167_v54 = vand.u32 4294901760, %v5196_v25 }
  0x8f   :  { %1020 = vmatpush1.msra.mxu0 %v5150_v9  ;;  %1192 = vmatpush1.msra.mxu1 %v1191_v31  ;;  %v1244_v31 = vsub.f32 %v5223_v33, %v6900_v19  ;;  %v1227_v6 = vand.u32 4294901760, %v1226_v11  ;;  %v7169_v11 = vld [vmem:[#allocation29_spill] sm:$0xff]  ;;  %v7185_v19 = vld [vmem:[#allocation27_spill] sm:$0xff] }
  0x90   :  { %1022 = vmatprep.subr.mxu0 %v5185_v21  ;;  %1198 = vmatprep.subr.mxu1 %v1197_v42  ;;  %v1238_v27 = vsub.f32 %v5196_v25, %v7167_v54  ;;  %v7168_v42 = vand.u32 4294901760, %v5227_v34  ;;  %v1233_v51 = vand.u32 4294901760, %v1232_v55 }
  0x91   :  { %1024 = vmatpush1.msra.mxu0 %v5198_v38  ;;  %1204 = vmatpush1.msra.mxu1 %v1203_v4  ;;  %v1256_v4 = vsub.f32 %v5239_v37, %v6899_v1  ;;  %v7184_v1 = vld [vmem:[#allocation19_spill] sm:$0xff] }
  0x92   :  { %1026 = vmatprep.subr.mxu0 %v5205_v13  ;;  %1210 = vmatprep.subr.mxu1 %v1209_v26  ;;  %v1250_v12 = vsub.f32 %v5227_v34, %v7168_v42  ;;  %v1239_v54 = vand.u32 4294901760, %v1238_v27  ;;  %v1262_v26 = vsub.f32 %v5243_v29, %v6898_v20  ;;  %v1245_v42 = vand.u32 4294901760, %v1244_v31  ;;  %v7170_v27 = vld [vmem:[#allocation22_spill] sm:$0xff]  ;;  %v7171_v31 = vld [vmem:[#allocation23_spill] sm:$0xff]  ;;  %v7183_v20 = vld [vmem:[#allocation21_spill] sm:$0xff] }
  0x93   :  { %1028 = vmatpush1.msra.mxu0 %v5215_v8  ;;  %1216 = vmatpush1.msra.mxu1 %v1215_v53  ;;  %v1257_v55 = vand.u32 4294901760, %v1256_v4  ;;  %v7175_v4 = vld [vmem:[#allocation7_spill] sm:$0xff] }
  0x94   :  { %1061 = vmatprep.mubr.f32.mxu0 %v7070_v39  ;;  %1222 = vmatprep.subr.mxu1 %v1221_v15  ;;  %v1251_v53 = vand.u32 4294901760, %v1250_v12  ;;  %v1263_v15 = vand.u32 4294901760, %v1262_v26  ;;  %v7173_v12 = vld [vmem:[#allocation8_spill] sm:$0xff]  ;;  %v7177_v26 = vld [vmem:[#allocation10_spill] sm:$0xff] }
  0x95   :  { %1307 = vmatprep.subr.mxu0 %v4807_v30  ;;  %1067 = vmatmul.mubr.f32.vlgmr.msra.gmra.mxu0 %v7169_v11  ;;  %v7178_v11 = vld [vmem:[#allocation9_spill] sm:$0xff] }
  0x96   :  { %1228 = vmatpush1.msra.mxu1 %v1227_v6  ;;  %1310 = vmatpush1.msra.mxu0 %v4799_v32  ;;  %v7172_v6 = vld [vmem:[#allocation6_spill] sm:$0xff] }
  0x97   :  { %1234 = vmatprep.subr.mxu1 %v1233_v51  ;;  %1313 = vmatprep.subr.mxu0 %v4842_v46  ;;  %v7174_v51 = vld [vmem:[#allocation15_spill] sm:$0xff] }
  0x98   :  { %1240 = vmatpush1.msra.mxu1 %v1239_v54  ;;  %1316 = vmatpush1.msra.mxu0 %v4813_v40  ;;  %v7176_v54 = vld [vmem:[#allocation18_spill] sm:$0xff] }
  0x99   :  { %1246 = vmatprep.subr.mxu1 %v1245_v42  ;;  %1319 = vmatprep.subr.mxu0 %v4857_v10  ;;  %v7179_v42 = vld [vmem:[#allocation12_spill] sm:$0xff] }
  0x9a   :  { %1252 = vmatpush1.msra.mxu1 %v1251_v53  ;;  %1322 = vmatpush1.msra.mxu0 %v4863_v43  ;;  %v7180_v53 = vld [vmem:[#allocation11_spill] sm:$0xff] }
  0x9b   :  { %1258 = vmatprep.subr.mxu1 %v1257_v55  ;;  %1325 = vmatprep.subr.mxu0 %v4909_v35  ;;  %v7181_v55 = vld [vmem:[#allocation13_spill] sm:$0xff] }
  0x9c   :  { %1264 = vmatpush1.msra.mxu1 %v1263_v15  ;;  %1297 = vmatprep.mubr.f32.mxu1 %v7070_v39  ;;  %v7182_v15 = vld [vmem:[#allocation14_spill] sm:$0xff] }
  0x9d   :  { %1328 = vmatpush1.msra.mxu0 %v4871_v47  ;;  %1299 = vmatmul.mubr.f32.vlgmr.msra.gmra.mxu1 %v7132_v48  ;;  %v7186_v48 = vld [vmem:[#allocation20_spill] sm:$0xff] }
  0x9e   :  { %1331 = vmatprep.subr.mxu0 %v4935_v49  ;;  %1443 = vmatprep.subr.mxu1 %v4771_v14 }
  0x9f   :  { %1334 = vmatpush1.msra.mxu0 %v4915_v63  ;;  %1445 = vmatpush1.msra.mxu1 %v4773_v44 }
  0xa0   :  { %1337 = vmatprep.subr.mxu0 %v4950_v7  ;;  %1447 = vmatprep.subr.mxu1 %v4801_v59 }
  0xa1   :  { %1340 = vmatpush1.msra.mxu0 %v4926_v28  ;;  %1449 = vmatpush1.msra.mxu1 %v4781_v45 }
  0xa2   :  { %1343 = vmatprep.subr.mxu0 %v4996_v18  ;;  %1451 = vmatprep.subr.mxu1 %v4815_v3 }
  0xa3   :  { %1346 = vmatpush1.msra.mxu0 %v4969_v16  ;;  %1453 = vmatpush1.msra.mxu1 %v4820_v57 }
  0xa4   :  { %1349 = vmatprep.subr.mxu0 %v7170_v27  ;;  %1455 = vmatprep.subr.mxu1 %v7171_v31 }
  0xa5   :  { %1352 = vmatpush1.msra.mxu0 %v5022_v52  ;;  %1457 = vmatpush1.msra.mxu1 %v7172_v6 }
  0xa6   :  { %1355 = vmatprep.subr.mxu0 %v5077_v22  ;;  %1459 = vmatprep.subr.mxu1 %v7173_v12 }
  0xa7   :  { %1358 = vmatpush1.msra.mxu0 %v7174_v51  ;;  %1461 = vmatpush1.msra.mxu1 %v7175_v4 }
  0xa8   :  { %1361 = vmatprep.subr.mxu0 %v7176_v54  ;;  %1463 = vmatprep.subr.mxu1 %v7177_v26 }
  0xa9   :  { %1364 = vmatpush1.msra.mxu0 %v5060_v41  ;;  %1465 = vmatpush1.msra.mxu1 %v7178_v11 }
  0xaa   :  { %1367 = vmatprep.subr.mxu0 %v5134_v2  ;;  %1467 = vmatprep.subr.mxu1 %v7179_v42 }
  0xab   :  { %1370 = vmatpush1.msra.mxu0 %v5138_v58  ;;  %1469 = vmatpush1.msra.mxu1 %v7180_v53 }
  0xac   :  { %1373 = vmatprep.subr.mxu0 %v5156_v60  ;;  %1471 = vmatprep.subr.mxu1 %v7181_v55 }
  0xad   :  { %1376 = vmatpush1.msra.mxu0 %v5141_v17  ;;  %1473 = vmatpush1.msra.mxu1 %v7182_v15  ;;  %v7187_v17 = vld [vmem:[#allocation16_spill] sm:$0xff] }
  0xae   :  { %1379 = vmatprep.subr.mxu0 %v5179_v62  ;;  %1475 = vmatprep.subr.mxu1 %v7183_v20 }
  0xaf   :  { %1382 = vmatpush1.msra.mxu0 %v5161_v0  ;;  %1477 = vmatpush1.msra.mxu1 %v7184_v1 }
  0xb0   :  { %1385 = vmatprep.subr.mxu0 %v5209_v24  ;;  %1479 = vmatprep.subr.mxu1 %v7185_v19 }
  0xb1   :  { %1388 = vmatpush1.msra.mxu0 %v5196_v25  ;;  %1481 = vmatpush1.msra.mxu1 %v7186_v48  ;;  %v7188_v25 = vld [vmem:[#allocation25_spill] sm:$0xff] }
  0xb2   :  { %1391 = vmatprep.subr.mxu0 %v5223_v33  ;;  %1483 = vmatprep.subr.mxu1 %v7187_v17  ;;  %v7189_v17 = vand.u32 4294901760, %v4807_v30  ;;  %v7193_v30 = vand.u32 4294901760, %v4857_v10  ;;  %v7198_v10 = vand.u32 4294901760, %v4935_v49  ;;  %v7202_v49 = vand.u32 4294901760, %v4996_v18  ;;  %v1854_v18 = vld [vmem:[%s6778_s3 + $0xf0] sm:$0xff] }
  0xb3   :  { %1394 = vmatpush1.msra.mxu0 %v5227_v34  ;;  %1485 = vmatpush1.msra.mxu1 %v5086_v61  ;;  %v7190_v61 = vand.u32 4294901760, %v4799_v32  ;;  %v7194_v32 = vand.u32 4294901760, %v4863_v43  ;;  %v7199_v43 = vand.u32 4294901760, %v4915_v63  ;;  %v7207_v63 = vand.u32 4294901760, %v7174_v51  ;;  %v1836_v51 = vld [vmem:[%s6778_s3 + $0x60] sm:$0xff] }
  0xb4   :  { %1397 = vmatprep.subr.mxu0 %v5239_v37  ;;  %1487 = vmatprep.subr.mxu1 %v5101_v5 }
  0xb5   :  { %1400 = vmatpush1.msra.mxu0 %v5243_v29  ;;  %1433 = vmatprep.mubr.f32.mxu0 %v7070_v39  ;;  %v7191_v29 = vand.u32 4294901760, %v4842_v46  ;;  %v7195_v46 = vand.u32 4294901760, %v4909_v35  ;;  %v7200_v35 = vand.u32 4294901760, %v4950_v7  ;;  %v7209_v7 = vand.u32 4294901760, %v7176_v54 }
  0xb6   :  { %1489 = vmatpush1.msra.mxu1 %v5088_v36  ;;  %1436 = vmatmul.mubr.f32.vlgmr.msra.gmra.mxu0 %v7188_v25  ;;  %v7192_v36 = vand.u32 4294901760, %v4813_v40  ;;  %v7196_v40 = vand.u32 4294901760, %v4871_v47  ;;  %v7201_v47 = vand.u32 4294901760, %v4926_v28  ;;  %v1838_v28 = vld [vmem:[%s6778_s3 + $0x70] sm:$0xff]  ;;  %v5427_v25 = vand.u32 4294901760, %v1854_v18 }
  0xb7   :  { %1491 = vmatprep.subr.mxu1 %v5127_v50  ;;  %1551 = vmatprep.subr.mxu0 %v7189_v17  ;;  %v7210_v17 = vand.u32 4294901760, %v5060_v41  ;;  %v7212_v41 = vand.u32 4294901760, %v5138_v58  ;;  %v7215_v58 = vld [vmem:[#allocation30_spill] sm:$0xff] }
  0xb8   :  { %1493 = vmatpush1.msra.mxu1 %v5116_v56  ;;  %1555 = vmatpush1.msra.mxu0 %v7190_v61  ;;  %v7197_v61 = vld [vmem:[#allocation26_spill] sm:$0xff] }
  0xb9   :  { %1495 = vmatprep.subr.mxu1 %v5163_v23  ;;  %1559 = vmatprep.subr.mxu0 %v7191_v29  ;;  %v7211_v29 = vand.u32 4294901760, %v5134_v2 }
  0xba   :  { %1497 = vmatpush1.msra.mxu1 %v5150_v9  ;;  %1563 = vmatpush1.msra.mxu0 %v7192_v36  ;;  %v1837_v36 = vld [vmem:[%s6778_s3 + $0x68] sm:$0xff] }
  0xbb   :  { %1499 = vmatprep.subr.mxu1 %v5185_v21  ;;  %1567 = vmatprep.subr.mxu0 %v7193_v30  ;;  %v5445_v2 = vand.u32 4294901760, %v1837_v36 }
  0xbc   :  { %1501 = vmatpush1.msra.mxu1 %v5198_v38  ;;  %1571 = vmatpush1.msra.mxu0 %v7194_v32  ;;  %v5479_v32 = vand.u32 4294901760, %v1836_v51 }
  0xbd   :  { %1503 = vmatprep.subr.mxu1 %v5205_v13  ;;  %1575 = vmatprep.subr.mxu0 %v7195_v46  ;;  %v1850_v46 = vld [vmem:[%s6778_s3 + $0xd0] sm:$0xff] }
  0xbe   :  { %1505 = vmatpush1.msra.mxu1 %v5215_v8  ;;  %1538 = vmatprep.mubr.f32.mxu1 %v7070_v39 }
  0xbf   :  { %1579 = vmatpush1.msra.mxu0 %v7196_v40  ;;  %1542 = vmatmul.mubr.f32.vlgmr.msra.gmra.mxu1 %v7197_v61  ;;  %v7218_v40 = vand.u32 4294901760, %v5161_v0  ;;  %v1834_v61 = vld [vmem:[%s6778_s3 + $0x50] sm:$0xff] }
  0xc0   :  { %1583 = vmatprep.subr.mxu0 %v7198_v10  ;;  %1717 = vmatprep.subr.mxu1 %v4771_v14  ;;  %v7203_v14 = vand.u32 4294901760, %v4969_v16  ;;  %v7219_v10 = vand.u32 4294901760, %v5209_v24 }
  0xc1   :  { %1587 = vmatpush1.msra.mxu0 %v7199_v43  ;;  %1719 = vmatpush1.msra.mxu1 %v4773_v44  ;;  %v7204_v44 = vand.u32 4294901760, %v7170_v27  ;;  %v5432_v27 = vand.u32 4294901760, %v1838_v28 }
  0xc2   :  { %1591 = vmatprep.subr.mxu0 %v7200_v35  ;;  %1721 = vmatprep.subr.mxu1 %v4801_v59  ;;  %v1855_v59 = vld [vmem:[%s6778_s3 + $0xf8] sm:$0xff] }
  0xc3   :  { %1595 = vmatpush1.msra.mxu0 %v7201_v47  ;;  %1723 = vmatpush1.msra.mxu1 %v4781_v45  ;;  %v7205_v45 = vand.u32 4294901760, %v5022_v52  ;;  %v5408_v52 = vand.u32 4294901760, %v1855_v59  ;;  %v1833_v47 = vld [vmem:[%s6778_s3 + $0x48] sm:$0xff] }
  0xc4   :  { %1599 = vmatprep.subr.mxu0 %v7202_v49  ;;  %1725 = vmatprep.subr.mxu1 %v4815_v3  ;;  %v1839_v3 = vld [vmem:[%s6778_s3 + $0x78] sm:$0xff] }
  0xc5   :  { %1603 = vmatpush1.msra.mxu0 %v7203_v14  ;;  %1727 = vmatpush1.msra.mxu1 %v4820_v57  ;;  %v7206_v57 = vand.u32 4294901760, %v5077_v22  ;;  %7208 = vst [vmem:[#allocation29_spill] sm:$0xff] %v5408_v52  ;;  %v1853_v22 = vld [vmem:[%s6778_s3 + $0xe8] sm:$0xff]  ;;  %v5419_v16 = vand.u32 4294901760, %v1839_v3  ;;  %v7220_v49 = vld [vmem:[#allocation31_spill] sm:$0xff] }
  0xc6   :  { %1607 = vmatprep.subr.mxu0 %v7204_v44  ;;  %1729 = vmatprep.subr.mxu1 %v7171_v31  ;;  %v5434_v31 = vand.u32 4294901760, %v1853_v22  ;;  %v7221_v14 = vand.u32 4294901760, %v7220_v49  ;;  %v5515_v44 = vand.u32 4294901760, %v1850_v46 }
  0xc7   :  { %1611 = vmatpush1.msra.mxu0 %v7205_v45  ;;  %1731 = vmatpush1.msra.mxu1 %v7172_v6  ;;  %v1852_v6 = vld [vmem:[%s6778_s3 + $0xe0] sm:$0xff]  ;;  %v5454_v54 = vsub.f32 %v1839_v3, %v5419_v16 }
  0xc8   :  { %1615 = vmatprep.subr.mxu0 %v7206_v57  ;;  %1733 = vmatprep.subr.mxu1 %v7173_v12  ;;  %v5443_v12 = vsub.f32 %v1855_v59, %v5408_v52  ;;  %v5477_v30 = vsub.f32 %v1853_v22, %v5434_v31  ;;  %v7223_v59 = vand.u32 4294901760, %v5223_v33  ;;  %v7224_v45 = vld [vmem:[#allocation16_spill] sm:$0xff] }
  0xc9   :  { %1619 = vmatpush1.msra.mxu0 %v7207_v63  ;;  %1735 = vmatpush1.msra.mxu1 %v7175_v4  ;;  %v7214_v4 = vand.u32 4294901760, %v5156_v60  ;;  %v1851_v60 = vld [vmem:[%s6778_s3 + $0xd8] sm:$0xff]  ;;  %v6916_v43 = vand.u32 4294901760, %v5454_v54  ;;  %v1848_v63 = vld [vmem:[%s6778_s3 + $0xc0] sm:$0xff] }
  0xca   :  { %1623 = vmatprep.subr.mxu0 %v7209_v7  ;;  %1737 = vmatprep.subr.mxu1 %v7177_v26  ;;  %7213 = vst [vmem:[#allocation22_spill] sm:$0xff] %v5443_v12  ;;  %v7216_v26 = vand.u32 4294901760, %v7215_v58  ;;  %v5498_v0 = vand.u32 4294901760, %v1851_v60  ;;  %v6910_v57 = vand.u32 4294901760, %v5477_v30  ;;  %v7227_v33 = vld [vmem:[#allocation28_spill] sm:$0xff]  ;;  %v5567_v58 = vsub.f32 %v1850_v46, %v5515_v44 }
  0xcb   :  { %1627 = vmatpush1.msra.mxu0 %v7210_v17  ;;  %1739 = vmatpush1.msra.mxu1 %v7178_v11  ;;  %v5460_v11 = vsub.f32 %v1854_v18, %v5427_v25  ;;  %v5523_v18 = vsub.f32 %v1836_v51, %v5479_v32  ;;  %v5541_v17 = vand.u32 4294901760, %v1833_v47  ;;  %v7231_v51 = vld [vmem:[#allocation32_spill] sm:$0xff] }
  0xcc   :  { %1631 = vmatprep.subr.mxu0 %v7211_v29  ;;  %1741 = vmatprep.subr.mxu1 %v7179_v42  ;;  %v5462_v42 = vand.u32 4294901760, %v1852_v6  ;;  %v7228_v29 = vand.u32 4294901760, %v5239_v37  ;;  %7233 = vst [vmem:[#allocation7_spill] sm:$0xff] %v5567_v58  ;;  %v5584_v46 = vsub.f32 %v5477_v30, %v6910_v57 }
  0xcd   :  { %1635 = vmatpush1.msra.mxu0 %v7212_v41  ;;  %1743 = vmatpush1.msra.mxu1 %v7180_v53  ;;  %v1835_v53 = vld [vmem:[%s6778_s3 + $0x58] sm:$0xff]  ;;  %v6915_v24 = vand.u32 4294901760, %v5460_v11  ;;  %7225 = vst [vmem:[#allocation6_spill] sm:$0xff] %v5523_v18 }
  0xce   :  { %1639 = vmatprep.subr.mxu0 %v7214_v4  ;;  %1745 = vmatprep.subr.mxu1 %v7181_v55  ;;  %v7217_v55 = vand.u32 4294901760, %v5179_v62  ;;  %v6919_v62 = vand.u32 4294901760, %v5443_v12  ;;  %v5500_v35 = vand.u32 4294901760, %v1835_v53  ;;  %v7232_v4 = vand.u32 4294901760, %v7231_v51 }
  0xcf   :  { %1643 = vmatpush1.msra.mxu0 %v7216_v26  ;;  %1747 = vmatpush1.msra.mxu1 %v7182_v15  ;;  %v5474_v15 = vsub.f32 %v1838_v28, %v5432_v27  ;;  %v7226_v28 = vand.u32 4294901760, %v5227_v34  ;;  %v5549_v34 = vsub.f32 %v5454_v54, %v6916_v43  ;;  %v5569_v26 = vand.u32 4294901760, %v1848_v63  ;;  %v1844_v43 = vld [vmem:[%s6778_s3 + $0xa0] sm:$0xff] }
  0xd0   :  { %1647 = vmatprep.subr.mxu0 %v7217_v55  ;;  %1749 = vmatprep.subr.mxu1 %v7183_v20  ;;  %v5489_v20 = vsub.f32 %v1837_v36, %v5445_v2  ;;  %v5536_v22 = vsub.f32 %v5443_v12, %v6919_v62  ;;  %v5555_v41 = vsub.f32 %v1835_v53, %v5500_v35  ;;  %v7235_v53 = vld [vmem:[#allocation17_spill] sm:$0xff]  ;;  %v7236_v55 = vld [vmem:[#allocation24_spill] sm:$0xff] }
  0xd1   :  { %1651 = vmatpush1.msra.mxu0 %v7218_v40  ;;  %1751 = vmatpush1.msra.mxu1 %v7184_v1  ;;  %v1849_v1 = vld [vmem:[%s6778_s3 + $0xc8] sm:$0xff]  ;;  %v6913_v3 = vand.u32 4294901760, %v5474_v15  ;;  %7234 = vst [vmem:[#allocation18_spill] sm:$0xff] %v5569_v26  ;;  %v1827_v62 = vld [vmem:[%s6778_s3 + $0x18] sm:$0xff] }
  0xd2   :  { %1655 = vmatprep.subr.mxu0 %v7219_v10  ;;  %1753 = vmatprep.subr.mxu1 %v7185_v19  ;;  %v5513_v19 = vsub.f32 %v1852_v6, %v5462_v42  ;;  %v6909_v7 = vand.u32 4294901760, %v5489_v20  ;;  %v5539_v36 = vand.u32 4294901760, %v1849_v1  ;;  %v5552_v6 = vsub.f32 %v1851_v60, %v5498_v0  ;;  %7230 = vst [vmem:[#allocation15_spill] sm:$0xff] %v5555_v41  ;;  %v1832_v60 = vld [vmem:[%s6778_s3 + $0x40] sm:$0xff] }
  0xd3   :  { %1659 = vmatpush1.msra.mxu0 %v7221_v14  ;;  %1755 = vmatpush1.msra.mxu1 %v7186_v48  ;;  %v5525_v48 = vand.u32 4294901760, %v1834_v61  ;;  %v5579_v40 = vsub.f32 %v5474_v15, %v6913_v3  ;;  %v6907_v10 = vand.u32 4294901760, %v5523_v18  ;;  %v2127_v14 = vand.u32 4294901760, %v5536_v22 }
  0xd4   :  { %7222 = vst [vmem:[#allocation23_spill] sm:$0xff] %v5513_v19  ;;  %1663 = vmatprep.subr.mxu0 %v7223_v59  ;;  %1757 = vmatprep.subr.mxu1 %v7224_v45  ;;  %7229 = vst [vmem:[#allocation8_spill] sm:$0xff] %v5552_v6  ;;  %v6908_v37 = vand.u32 4294901760, %v5513_v19  ;;  %v5596_v59 = vsub.f32 %v5489_v20, %v6909_v7  ;;  %v5599_v45 = vsub.f32 %v1849_v1, %v5539_v36  ;;  %v1831_v1 = vld [vmem:[%s6778_s3 + $0x38] sm:$0xff] }
  0xd5   :  { %1667 = vmatpush1.msra.mxu0 %v7226_v28  ;;  %1759 = vmatpush1.msra.mxu1 %v7227_v33  ;;  %v5588_v49 = vsub.f32 %v1834_v61, %v5525_v48  ;;  %v5602_v28 = vsub.f32 %v1833_v47, %v5541_v17  ;;  %v1847_v61 = vld [vmem:[%s6778_s3 + $0xb8] sm:$0xff]  ;;  %v6912_v33 = vand.u32 4294901760, %v5555_v41  ;;  %v5612_v22 = vand.u32 4294901760, %v1832_v60 }
  0xd6   :  { %1671 = vmatprep.subr.mxu0 %v7228_v29  ;;  %1761 = vmatprep.subr.mxu1 %v5101_v5  ;;  %v5563_v5 = vsub.f32 %v5460_v11, %v6915_v24  ;;  %7238 = vst [vmem:[#allocation9_spill] sm:$0xff] %v5599_v45  ;;  %v6914_v29 = vand.u32 4294901760, %v5567_v58  ;;  %v2022_v51 = vand.u32 4294901760, %v5579_v40  ;;  %v2029_v7 = vand.u32 4294901760, %v5596_v59 }
  0xd7   :  { %1675 = vmatpush1.msra.mxu0 %v7232_v4  ;;  %1708 = vmatprep.mubr.f32.mxu0 %v7070_v39  ;;  %7237 = vst [vmem:[#allocation10_spill] sm:$0xff] %v5588_v49  ;;  %7239 = vst [vmem:[#allocation12_spill] sm:$0xff] %v5602_v28  ;;  %v6917_v4 = vand.u32 4294901760, %v5588_v49  ;;  %v6920_v40 = vand.u32 4294901760, %v5602_v28  ;;  %v5667_v57 = vsub.f32 %v1832_v60, %v5612_v22  ;;  %v1829_v60 = vld [vmem:[%s6778_s3 + $0x28] sm:$0xff] }
  0xd8   :  { %1763 = vmatpush1.msra.mxu1 %v7235_v53  ;;  %1710 = vmatmul.mubr.f32.vlgmr.msra.gmra.mxu0 %v7236_v55  ;;  %v2134_v47 = vand.u32 4294901760, %v5563_v5  ;;  %v5638_v5 = vand.u32 4294901760, %v1847_v61  ;;  %v6918_v53 = vand.u32 4294901760, %v5599_v45 }
  0xd9   :  { %1765 = vmatprep.subr.mxu1 %v5127_v50  ;;  %1812 = vmatprep.mubr.f32.mxu1 %v7070_v39  ;;  %v2015_v39 = vand.u32 4294901760, %v5549_v34  ;;  %v6911_v50 = vand.u32 4294901760, %v5552_v6  ;;  %v5627_v34 = vsub.f32 %v1848_v63, %v5569_v26  ;;  %v1846_v63 = vld [vmem:[%s6778_s3 + $0xb0] sm:$0xff]  ;;  %7242 = vst [vmem:[#allocation14_spill] sm:$0xff] %v5667_v57 }
  0xda   :  { %1767 = vmatpush1.msra.mxu1 %v5116_v56  ;;  %3639 = vmatprep.subr.mxu0 %v5408_v52  ;;  %v5622_v56 = vsub.f32 %v5513_v19, %v6908_v37  ;;  %7241 = vst [vmem:[#allocation13_spill] sm:$0xff] %v5638_v5  ;;  %v1830_v37 = vld [vmem:[%s6778_s3 + $0x30] sm:$0xff]  ;;  %v5681_v3 = vand.u32 4294901760, %v1846_v63 }
  0xdb   :  { %1769 = vmatprep.subr.mxu1 %v5163_v23  ;;  %3640 = vmatpush3.msra.mxu0 %v5419_v16  ;;  %7240 = vst [vmem:[#allocation11_spill] sm:$0xff] %v5627_v34  ;;  %v5634_v23 = vsub.f32 %v5523_v18, %v6907_v10  ;;  %v5648_v10 = vand.u32 4294901760, %v1831_v1  ;;  %v5697_v24 = vand.u32 4294901760, %v1830_v37 }
  0xdc   :  { %1771 = vmatpush1.msra.mxu1 %v5150_v9  ;;  %3641 = vmatprep.subr.mxu0 %v5427_v25  ;;  %v2141_v9 = vand.u32 4294901760, %v5584_v46  ;;  %v5663_v46 = vsub.f32 %v5555_v41, %v6912_v33  ;;  %v2148_v59 = vand.u32 4294901760, %v5622_v56  ;;  %v5691_v56 = vsub.f32 %v5588_v49, %v6917_v4 }
  0xdd   :  { %1773 = vmatprep.subr.mxu1 %v5185_v21  ;;  %3642 = vmatpush3.msra.mxu0 %v5432_v27  ;;  %v5658_v21 = vsub.f32 %v5552_v6, %v6911_v50  ;;  %v5677_v50 = vsub.f32 %v5567_v58, %v6914_v29  ;;  %v5695_v29 = vsub.f32 %v1847_v61, %v5638_v5  ;;  %v1841_v58 = vld [vmem:[%s6778_s3 + $0x88] sm:$0xff]  ;;  %v1840_v6 = vld [vmem:[%s6778_s3 + $0x80] sm:$0xff] }
  0xde   :  { %1775 = vmatpush1.msra.mxu1 %v5198_v38  ;;  %3643 = vmatprep.subr.mxu0 %v5434_v31  ;;  %v1845_v38 = vld [vmem:[%s6778_s3 + $0xa8] sm:$0xff]  ;;  %v5714_v61 = vsub.f32 %v1831_v1, %v5648_v10  ;;  %v1843_v1 = vld [vmem:[%s6778_s3 + $0x98] sm:$0xff] }
  0xdf   :  { %1777 = vmatprep.subr.mxu1 %v5205_v13  ;;  %3644 = vmatpush3.msra.mxu0 %v5445_v2  ;;  %v2036_v13 = vand.u32 4294901760, %v5634_v23  ;;  %7243 = vst [vmem:[#allocation21_spill] sm:$0xff] %v5695_v29  ;;  %v5711_v23 = vsub.f32 %v5602_v28, %v6920_v40  ;;  %v5716_v4 = vand.u32 4294901760, %v1845_v38  ;;  %v5725_v40 = vand.u32 4294901760, %v1829_v60 }
  0xe0   :  { %1779 = vmatpush1.msra.mxu1 %v5215_v8  ;;  %3645 = vmatprep.subr.mxu0 %v5462_v42  ;;  %v5706_v8 = vsub.f32 %v5599_v45, %v6918_v53  ;;  %7244 = vst [vmem:[#allocation19_spill] sm:$0xff] %v5714_v61  ;;  %v2043_v53 = vand.u32 4294901760, %v5663_v46  ;;  %v2162_v33 = vand.u32 4294901760, %v5677_v50  ;;  %v7245_v28 = vand.u32 4294901760, %v5627_v34 }
  0xe1   :  { %1814 = vmatmul.mubr.f32.vlgmr.msra.gmra.mxu1 %v7236_v55  ;;  %3674 = vmatprep.subr.mxu1 %v2127_v14  ;;  %v1828_v55 = vld [vmem:[%s6778_s3 + $0x20] sm:$0xff]  ;;  %v2155_v14 = vand.u32 4294901760, %v5658_v21  ;;  %v5738_v21 = vsub.f32 %v1846_v63, %v5681_v3  ;;  %v5740_v46 = vand.u32 4294901760, %v1844_v43  ;;  %v1842_v63 = vld [vmem:[%s6778_s3 + $0x90] sm:$0xff]  ;;  %v5762_v50 = vand.u32 4294901760, %v1843_v1 }
  0xe2   :  { %3675 = vmatpush3.msra.mxu1 %v2015_v39  ;;  %3646 = vmatpush3.msra.mxu0 %v5479_v32  ;;  %v5734_v39 = vsub.f32 %v5627_v34, %v7245_v28  ;;  %v5749_v28 = vsub.f32 %v1830_v37, %v5697_v24  ;;  %v5751_v34 = vand.u32 4294901760, %v1828_v55  ;;  %v2169_v45 = vand.u32 4294901760, %v5706_v8  ;;  %v1826_v37 = vld [vmem:[%s6778_s3 + $0x10] sm:$0xff] }
  0xe3   :  { %3676 = vmatprep.subr.mxu1 %v2134_v47  ;;  %3647 = vmatprep.subr.mxu0 %v5498_v0  ;;  %7246 = vst [vmem:[#allocation27_spill] sm:$0xff] %v5738_v21  ;;  %v2050_v47 = vand.u32 4294901760, %v5691_v56  ;;  %v5760_v56 = vsub.f32 %v1845_v38, %v5716_v4  ;;  %v2057_v49 = vand.u32 4294901760, %v5711_v23  ;;  %v5775_v38 = vand.u32 4294901760, %v1827_v62 }
  0xe4   :  { %3677 = vmatpush3.msra.mxu1 %v2022_v51  ;;  %3648 = vmatpush3.msra.mxu0 %v5500_v35  ;;  %7247 = vst [vmem:[#allocation20_spill] sm:$0xff] %v5749_v28  ;;  %v5773_v51 = vsub.f32 %v1829_v60, %v5725_v40  ;;  %v1825_v60 = vld [vmem:[%s6778_s3 + $0x8] sm:$0xff]  ;;  %v7249_v41 = vand.u32 4294901760, %v5695_v29  ;;  %v5797_v23 = vsub.f32 %v1828_v55, %v5751_v34  ;;  %v5812_v55 = vand.u32 4294901760, %v1841_v58 }
  0xe5   :  { %3678 = vmatprep.subr.mxu1 %v2141_v9  ;;  %3649 = vmatprep.subr.mxu0 %v5515_v44  ;;  %v7248_v9 = vand.u32 4294901760, %v5667_v57 }
  0xe6   :  { %3679 = vmatpush3.msra.mxu1 %v2029_v7  ;;  %3650 = vmatpush3.msra.mxu0 %v5525_v48  ;;  %v2176_v7 = vand.u32 4294901760, %v5734_v39  ;;  %7250 = vst [vmem:[#allocation25_spill] sm:$0xff] %v5797_v23  ;;  %v5810_v39 = vsub.f32 %v1843_v1, %v5762_v50  ;;  %v7253_v1 = vand.u32 4294901760, %v5738_v21 }
  0xe7   :  { %v2063_v8 = vsub.f32 %v5667_v57, %v7248_v9  ;;  %3680 = vmatprep.subr.mxu1 %v2148_v59  ;;  %3651 = vmatprep.subr.mxu0 %v5539_v36  ;;  %v5784_v9 = vsub.f32 %v1844_v43, %v5740_v46  ;;  %v5786_v57 = vand.u32 4294901760, %v1842_v63  ;;  %v2182_v59 = vsub.f32 %v5695_v29, %v7249_v41  ;;  %v1824_v29 = vld [vmem:[%s6778_s3] sm:$0xff] }
  0xe8   :  { %3681 = vmatpush3.msra.mxu1 %v2036_v13  ;;  %3652 = vmatpush3.msra.mxu0 %v5541_v17  ;;  %v5799_v43 = vand.u32 4294901760, %v1826_v37  ;;  %v7251_v13 = vand.u32 4294901760, %v5714_v61  ;;  %v5822_v41 = vand.u32 4294901760, %v1825_v60 }
  0xe9   :  { %3682 = vmatprep.subr.mxu1 %v2155_v14  ;;  %3653 = vmatprep.subr.mxu0 %v5569_v26  ;;  %v2064_v19 = vand.u32 4294901760, %v2063_v8  ;;  %v5832_v8 = vand.u32 4294901760, %v1840_v6  ;;  %v5842_v26 = vand.u32 4294901760, %v1824_v29 }
  0xea   :  { %v2070_v18 = vsub.f32 %v5714_v61, %v7251_v13  ;;  %3683 = vmatpush3.msra.mxu1 %v2043_v53  ;;  %3654 = vmatpush3.msra.mxu0 %v5612_v22  ;;  %v5820_v13 = vsub.f32 %v1827_v62, %v5775_v38  ;;  %v2189_v61 = vsub.f32 %v5738_v21, %v7253_v1  ;;  %v7255_v62 = vand.u32 4294901760, %v5749_v28 }
  0xeb   :  { %3684 = vmatprep.subr.mxu1 %v2162_v33  ;;  %3655 = vmatprep.subr.mxu0 %v5638_v5  ;;  %v5830_v53 = vsub.f32 %v1842_v63, %v5786_v57  ;;  %v5840_v1 = vsub.f32 %v1826_v37, %v5799_v43  ;;  %v2183_v21 = vand.u32 4294901760, %v2182_v59  ;;  %v7257_v63 = vand.u32 4294901760, %v5760_v56 }
  0xec   :  { %7252 = vst [vmem:[#allocation26_spill] sm:$0xff] %v5820_v13  ;;  %3685 = vmatpush3.msra.mxu1 %v2050_v47  ;;  %v2077_v14 = vsub.f32 %v5749_v28, %v7255_v62  ;;  %3656 = vmatpush3.msra.mxu0 %v5648_v10  ;;  %v5850_v62 = vsub.f32 %v1841_v58, %v5812_v55  ;;  %v2071_v33 = vand.u32 4294901760, %v2070_v18  ;;  %v7259_v37 = vand.u32 4294901760, %v5773_v51 }
  0xed   :  { %7254 = vst [vmem:[#allocation30_spill] sm:$0xff] %v5830_v53  ;;  %7256 = vst [vmem:[#allocation31_spill] sm:$0xff] %v5840_v1  ;;  %3686 = vmatprep.subr.mxu1 %v2169_v45  ;;  %v2196_v5 = vsub.f32 %v5760_v56, %v7257_v63  ;;  %3657 = vmatprep.subr.mxu0 %v5681_v3  ;;  %v5858_v59 = vsub.f32 %v1825_v60, %v5822_v41  ;;  %v2190_v63 = vand.u32 4294901760, %v2189_v61 }
  0xee   :  { %7258 = vst [vmem:[#allocation16_spill] sm:$0xff] %v5850_v62  ;;  %3687 = vmatpush3.msra.mxu1 %v2057_v49  ;;  %v2084_v28 = vsub.f32 %v5773_v51, %v7259_v37  ;;  %3658 = vmatpush3.msra.mxu0 %v5697_v24  ;;  %v7261_v47 = vand.u32 4294901760, %v5784_v9  ;;  %v5866_v18 = vsub.f32 %v1840_v6, %v5832_v8  ;;  %v2078_v37 = vand.u32 4294901760, %v2077_v14 }
  0xef   :  { %7260 = vst [vmem:[#allocation28_spill] sm:$0xff] %v5858_v59  ;;  %3688 = vmatprep.subr.mxu1 %v2176_v7  ;;  %3659 = vmatprep.subr.mxu0 %v5716_v4  ;;  %v7263_v45 = vand.u32 4294901760, %v5797_v23  ;;  %v5874_v61 = vsub.f32 %v1824_v29, %v5842_v26  ;;  %v7265_v49 = vand.u32 4294901760, %v5810_v39 }
  0xf0   :  { %v2203_v58 = vsub.f32 %v5784_v9, %v7261_v47  ;;  %7262 = vst [vmem:[#allocation32_spill] sm:$0xff] %v5866_v18  ;;  %3689 = vmatpush3.msra.mxu1 %v2064_v19  ;;  %3660 = vmatpush3.msra.mxu0 %v5725_v40  ;;  %v2197_v47 = vand.u32 4294901760, %v2196_v5  ;;  %v6957_v19 = vand.u32 4294901760, %v5850_v62  ;;  %v2085_v14 = vand.u32 4294901760, %v2084_v28 }
  0xf1   :  { %v2091_v60 = vsub.f32 %v5797_v23, %v7263_v45  ;;  %7264 = vst [vmem:[#allocation17_spill] sm:$0xff] %v5874_v61  ;;  %3690 = vmatprep.subr.mxu1 %v2183_v21  ;;  %v2210_v6 = vsub.f32 %v5810_v39, %v7265_v49  ;;  %3661 = vmatprep.subr.mxu0 %v5740_v46  ;;  %v7266_v45 = vand.u32 4294901760, %v5820_v13  ;;  %v7267_v5 = vand.u32 4294901760, %v5830_v53 }
  0xf2   :  { %3691 = vmatpush3.msra.mxu1 %v2071_v33  ;;  %3662 = vmatpush3.msra.mxu0 %v5751_v34  ;;  %v2204_v29 = vand.u32 4294901760, %v2203_v58  ;;  %v6956_v49 = vand.u32 4294901760, %v5866_v18  ;;  %v7268_v33 = vand.u32 4294901760, %v5840_v1  ;;  %v6955_v23 = vand.u32 4294901760, %v5874_v61 }
  0xf3   :  { %v2098_v7 = vsub.f32 %v5820_v13, %v7266_v45  ;;  %3692 = vmatprep.subr.mxu1 %v2190_v63  ;;  %v2217_v21 = vsub.f32 %v5830_v53, %v7267_v5  ;;  %3663 = vmatprep.subr.mxu0 %v5762_v50  ;;  %v2092_v28 = vand.u32 4294901760, %v2091_v60  ;;  %v2211_v63 = vand.u32 4294901760, %v2210_v6 }
  0xf4   :  { %3693 = vmatpush3.msra.mxu1 %v2078_v37  ;;  %v2105_v45 = vsub.f32 %v5840_v1, %v7268_v33  ;;  %3664 = vmatpush3.msra.mxu0 %v5775_v38  ;;  %v2224_v58 = vsub.f32 %v5850_v62, %v6957_v19  ;;  %v7269_v37 = vand.u32 4294901760, %v5858_v59 }
  0xf5   :  { %3694 = vmatprep.subr.mxu1 %v2197_v47  ;;  %3665 = vmatprep.subr.mxu0 %v5786_v57  ;;  %v2099_v5 = vand.u32 4294901760, %v2098_v7  ;;  %v2218_v33 = vand.u32 4294901760, %v2217_v21  ;;  %v2231_v47 = vsub.f32 %v5866_v18, %v6956_v49  ;;  %v2119_v7 = vsub.f32 %v5874_v61, %v6955_v23 }
  0xf6   :  { %3695 = vmatpush3.msra.mxu1 %v2085_v14  ;;  %v2112_v60 = vsub.f32 %v5858_v59, %v7269_v37  ;;  %3666 = vmatpush3.msra.mxu0 %v5799_v43  ;;  %v2106_v6 = vand.u32 4294901760, %v2105_v45  ;;  %v2225_v14 = vand.u32 4294901760, %v2224_v58  ;;  %v4086_v45 = vmov 0  }
  0xf7   :  { %3696 = vmatprep.subr.mxu1 %v2204_v29  ;;  %3667 = vmatprep.subr.mxu0 %v5812_v55  ;;  %v2232_v21 = vand.u32 4294901760, %v2231_v47  ;;  %v90_v58 = vlaneseq }
  0xf8   :  { %3697 = vmatpush3.msra.mxu1 %v2092_v28  ;;  %3668 = vmatpush3.msra.mxu0 %v5822_v41  ;;  %v2113_v29 = vand.u32 4294901760, %v2112_v60  ;;  %v2120_v28 = vand.u32 4294901760, %v2119_v7  ;;  %v5922_v60 = vld [vmem:[%s6777_s2] sm:$0xf] }
  0xf9   :  { %3698 = vmatprep.subr.mxu1 %v2211_v63  ;;  %3669 = vmatprep.subr.mxu0 %v5832_v8  ;;  %v3638_v63 = vld [vmem:[#allocation2] ss:$0 sm:$0xff]  ;;  %7271 = vst [vmem:[#allocation33_spill] sm:$0xff] %v5922_v60 }
  0xfa   :  { %3699 = vmatpush3.msra.mxu1 %v2099_v5  ;;  %3670 = vmatpush3.msra.mxu0 %v5842_v26  ;;  %v5916_v5 = vshrl.u32 %v90_v58, 7 }
  0xfb   :  { %3700 = vmatprep.subr.mxu1 %v2218_v33  ;;  %3709 = vmatprep.subr.mxu0 %v5443_v12  ;;  %v213_v33 = vpop.f32.mrf.mxu0 }
  0xfc   :  { %3701 = vmatpush3.msra.mxu1 %v2106_v6  ;;  %4062 = vset.pattern.permute.xlu0 %v4086_v45  ;;  %7270 = vst [vmem:[#allocation24_spill] sm:$0xff] %v5916_v5  ;;  %v92_v37 = vsub.s32 0, %v5916_v5  ;;  %v96_v47 = vsub.s32 1, %v5916_v5 }
  0xfd   :  { %3702 = vmatprep.subr.mxu1 %v2225_v14  ;;  %1895 = vperm.xlu0 %4062, %v3638_v63   ;;  %v215_v7 = vpop.f32.mrf.mxu0  ;;  %v445_v14 = vpop.f32.mrf.mxu1 }
  0xfe   :  { %3703 = vmatpush3.msra.mxu1 %v2113_v29  ;;  %v93_v6 = vrot.slane %v5922_v60, %v92_v37  ;;  %v97_v29 = vrot.slane %v5922_v60, %v96_v47 }
  0xff   :  { %3704 = vmatprep.subr.mxu1 %v2232_v21  ;;  %v447_v45 = vpop.f32.mrf.mxu1 }
 0x100   :  { %3705 = vmatpush3.msra.mxu1 %v2120_v28  ;;  %v214_v28 = vadd.f32 %v213_v33, %v93_v6  ;;  %v216_v63 = vadd.f32 %v215_v7, %v97_v29 }
 0x101   :  { %3744 = vmatprep.subr.mxu1 %v5408_v52 }
 0x102   :  { %v446_v49 = vadd.f32 %v445_v14, %v214_v28  ;;  %v448_v12 = vadd.f32 %v447_v45, %v216_v63  ;;  %v7280_v28 = vld [vmem:[#allocation9_spill] sm:$0xff]  ;;  %v7281_v45 = vld [vmem:[#allocation12_spill] sm:$0xff]  ;;  %v7282_v63 = vld [vmem:[#allocation11_spill] sm:$0xff] }
 0x111   :  { %v582_v21 = vpop.f32.mrf.mxu0 }
 0x112   :  { %v583_v61 = vadd.f32 %v582_v21, %v446_v49  ;;  %v7276_v49 = vld [vmem:[#allocation13_spill] sm:$0xff]  ;;  %v7279_v21 = vld [vmem:[#allocation10_spill] sm:$0xff] }
 0x113   :  { %v584_v58 = vpop.f32.mrf.mxu0 }
 0x114   :  { %v585_v59 = vadd.f32 %v584_v58, %v448_v12  ;;  %v7283_v58 = vld [vmem:[#allocation14_spill] sm:$0xff] }
 0x119   :  { %v688_v23 = vpop.f32.mrf.mxu1 }
 0x11a   :  { %v689_v62 = vadd.f32 %v688_v23, %v583_v61  ;;  %v7274_v61 = vld [vmem:[#allocation6_spill] sm:$0xff] }
 0x11b   :  { %v690_v18 = vpop.f32.mrf.mxu1 }
 0x11c   :  { %v691_v1 = vadd.f32 %v690_v18, %v585_v59  ;;  %v7272_v59 = vld [vmem:[#allocation23_spill] sm:$0xff]  ;;  %v7273_v18 = vld [vmem:[#allocation18_spill] sm:$0xff] }
 0x133   :  { %v856_v19 = vpop.f32.mrf.mxu0 }
 0x134   :  { %v857_v37 = vadd.f32 %v856_v19, %v689_v62  ;;  %v7275_v19 = vld [vmem:[#allocation8_spill] sm:$0xff] }
 0x135   :  { %v858_v5 = vpop.f32.mrf.mxu0 }
 0x136   :  { %v859_v13 = vadd.f32 %v858_v5, %v691_v1  ;;  %v7277_v5 = vld [vmem:[#allocation15_spill] sm:$0xff] }
 0x13b   :  { %v960_v53 = vpop.f32.mrf.mxu1 }
 0x13c   :  { %v961_v52 = vadd.f32 %v960_v53, %v857_v37  ;;  %v7284_v37 = vld [vmem:[#allocation21_spill] sm:$0xff] }
 0x13d   :  { %v962_v47 = vpop.f32.mrf.mxu1 }
 0x13e   :  { %v1820_v60 = vmax.f32 %v961_v52, 0.0  ;;  %v963_v33 = vadd.f32 %v962_v47, %v859_v13  ;;  %v7285_v47 = vld [vmem:[#allocation19_spill] sm:$0xff] }
 0x140   :  { %v5927_v6 = vand.u32 4294901760, %v1820_v60  ;;  %v1821_v7 = vmax.f32 %v963_v33, 0.0  ;;  %v7286_v33 = vld [vmem:[#allocation27_spill] sm:$0xff] }
 0x142   :  { %v5930_v14 = vsub.f32 %v1820_v60, %v5927_v6  ;;  %v5932_v29 = vand.u32 4294901760, %v1821_v7  ;;  %v7278_v60 = vld [vmem:[#allocation7_spill] sm:$0xff] }
 0x144   :  { %v2002_v12 = vand.u32 4294901760, %v5930_v14  ;;  %v1995_v23 = vsub.f32 %v1821_v7, %v5932_v29  ;;  %2235 = vmatprep.mubr.f32.mxu1 %v5932_v29  ;;  %v7287_v7 = vld [vmem:[#allocation20_spill] sm:$0xff] }
 0x145   :  { %2237 = vmatmul.mubr.f32.vlgmr.msra.gmra.mxu1 %v5927_v6 }
 0x146   :  { %3745 = vmatpush3.msra.mxu1 %v5419_v16  ;;  %v1996_v52 = vand.u32 4294901760, %v1995_v23  ;;  %v2003_v13 = vsub.f32 %v5930_v14, %v2002_v12 }
 0x147   :  { %3746 = vmatprep.subr.mxu1 %v5427_v25 }
 0x148   :  { %3747 = vmatpush3.msra.mxu1 %v5432_v27  ;;  %2479 = vmatprep.mubr.f32.mxu1 %v1996_v52  ;;  %v1997_v53 = vsub.f32 %v1995_v23, %v1996_v52  ;;  %v2004_v62 = vand.u32 4294901760, %v2003_v13  ;;  %v7289_v52 = vld [vmem:[#allocation29_spill] sm:$0xff]  ;;  %v7290_v13 = vld [vmem:[#allocation26_spill] sm:$0xff] }
 0x149   :  { %3748 = vmatprep.subr.mxu1 %v5434_v31 }
 0x14a   :  { %3749 = vmatpush3.msra.mxu1 %v5445_v2  ;;  %v1998_v1 = vand.u32 4294901760, %v1997_v53  ;;  %v7291_v53 = vld [vmem:[#allocation30_spill] sm:$0xff] }
 0x14b   :  { %3750 = vmatprep.subr.mxu1 %v5462_v42 }
 0x14c   :  { %3751 = vmatpush3.msra.mxu1 %v5479_v32  ;;  %1999 = vmatprep.mubr.f32.mxu0 %v1998_v1  ;;  %v7292_v1 = vld [vmem:[#allocation31_spill] sm:$0xff] }
 0x14d   :  { %3752 = vmatprep.subr.mxu1 %v5498_v0  ;;  %2005 = vmatmul.mubr.f32.vlgmr.msra.gmra.mxu0 %v2004_v62  ;;  %v7293_v62 = vld [vmem:[#allocation16_spill] sm:$0xff] }
 0x14e   :  { %3710 = vmatpush3.msra.mxu0 %v5454_v54  ;;  %3753 = vmatpush3.msra.mxu1 %v5500_v35 }
 0x14f   :  { %3711 = vmatprep.subr.mxu0 %v5460_v11  ;;  %2372 = vmatprep.mubr.f32.mxu0 %v1995_v23  ;;  %v7288_v23 = vld [vmem:[#allocation25_spill] sm:$0xff] }
 0x150   :  { %3754 = vmatprep.subr.mxu1 %v5515_v44  ;;  %3712 = vmatpush3.msra.mxu0 %v5474_v15 }
 0x151   :  { %3755 = vmatpush3.msra.mxu1 %v5525_v48  ;;  %3713 = vmatprep.subr.mxu0 %v5477_v30 }
 0x152   :  { %3756 = vmatprep.subr.mxu1 %v5539_v36  ;;  %3714 = vmatpush3.msra.mxu0 %v5489_v20 }
 0x153   :  { %3757 = vmatpush3.msra.mxu1 %v5541_v17  ;;  %3715 = vmatprep.subr.mxu0 %v7272_v59 }
 0x154   :  { %3758 = vmatprep.subr.mxu1 %v7273_v18  ;;  %3716 = vmatpush3.msra.mxu0 %v7274_v61 }
 0x155   :  { %3759 = vmatpush3.msra.mxu1 %v5612_v22  ;;  %3717 = vmatprep.subr.mxu0 %v7275_v19 }
 0x156   :  { %3760 = vmatprep.subr.mxu1 %v7276_v49  ;;  %3718 = vmatpush3.msra.mxu0 %v7277_v5 }
 0x157   :  { %3761 = vmatpush3.msra.mxu1 %v5648_v10  ;;  %3719 = vmatprep.subr.mxu0 %v7278_v60 }
 0x158   :  { %3762 = vmatprep.subr.mxu1 %v5681_v3  ;;  %3720 = vmatpush3.msra.mxu0 %v7279_v21 }
 0x159   :  { %3763 = vmatpush3.msra.mxu1 %v5697_v24  ;;  %3721 = vmatprep.subr.mxu0 %v7280_v28 }
 0x15a   :  { %3764 = vmatprep.subr.mxu1 %v5716_v4  ;;  %3722 = vmatpush3.msra.mxu0 %v7281_v45 }
 0x15b   :  { %3765 = vmatpush3.msra.mxu1 %v5725_v40  ;;  %3723 = vmatprep.subr.mxu0 %v7282_v63 }
 0x15c   :  { %3766 = vmatprep.subr.mxu1 %v5740_v46  ;;  %3724 = vmatpush3.msra.mxu0 %v7283_v58 }
 0x15d   :  { %3767 = vmatpush3.msra.mxu1 %v5751_v34  ;;  %3725 = vmatprep.subr.mxu0 %v7284_v37 }
 0x15e   :  { %3768 = vmatprep.subr.mxu1 %v5762_v50  ;;  %3726 = vmatpush3.msra.mxu0 %v7285_v47 }
 0x15f   :  { %3769 = vmatpush3.msra.mxu1 %v5775_v38  ;;  %3727 = vmatprep.subr.mxu0 %v7286_v33 }
 0x160   :  { %3770 = vmatprep.subr.mxu1 %v5786_v57  ;;  %3728 = vmatpush3.msra.mxu0 %v7287_v7 }
 0x161   :  { %3771 = vmatpush3.msra.mxu1 %v5799_v43  ;;  %3729 = vmatprep.subr.mxu0 %v5760_v56 }
 0x162   :  { %3772 = vmatprep.subr.mxu1 %v5812_v55  ;;  %3730 = vmatpush3.msra.mxu0 %v5773_v51 }
 0x163   :  { %3773 = vmatpush3.msra.mxu1 %v5822_v41  ;;  %3731 = vmatprep.subr.mxu0 %v5784_v9 }
 0x164   :  { %3774 = vmatprep.subr.mxu1 %v5832_v8  ;;  %3732 = vmatpush3.msra.mxu0 %v7288_v23 }
 0x165   :  { %3775 = vmatpush3.msra.mxu1 %v5842_v26  ;;  %3733 = vmatprep.subr.mxu0 %v5810_v39 }
 0x166   :  { %2483 = vmatmul.mubr.f32.vlgmr.msra.gmra.mxu1 %v2002_v12  ;;  %3814 = vmatprep.subr.mxu1 %v7289_v52  ;;  %v7294_v12 = vld [vmem:[#allocation28_spill] sm:$0xff] }
 0x167   :  { %3734 = vmatpush3.msra.mxu0 %v7290_v13  ;;  %3815 = vmatpush3.msra.mxu1 %v5419_v16  ;;  %v1887_v16 = vld [vmem:[%s6778_s3 + $0x1f8] sm:$0xff] }
 0x168   :  { %2753 = vmatprep.mubr.f32.mxu1 %v5932_v29  ;;  %3735 = vmatprep.subr.mxu0 %v7291_v53  ;;  %v7295_v52 = vld [vmem:[#allocation32_spill] sm:$0xff] }
 0x169   :  { %3816 = vmatprep.subr.mxu1 %v5427_v25  ;;  %3736 = vmatpush3.msra.mxu0 %v7292_v1  ;;  %v7296_v25 = vld [vmem:[#allocation17_spill] sm:$0xff] }
 0x16a   :  { %3817 = vmatpush3.msra.mxu1 %v5432_v27  ;;  %3737 = vmatprep.subr.mxu0 %v7293_v62  ;;  %v1871_v27 = vld [vmem:[%s6778_s3 + $0x178] sm:$0xff] }
 0x16b   :  { %3818 = vmatprep.subr.mxu1 %v5434_v31  ;;  %3738 = vmatpush3.msra.mxu0 %v7294_v12  ;;  %v6021_v31 = vand.u32 4294901760, %v1887_v16  ;;  %v7297_v12 = vld [vmem:[#allocation22_spill] sm:$0xff] }
 0x16c   :  { %3819 = vmatpush3.msra.mxu1 %v5445_v2  ;;  %3739 = vmatprep.subr.mxu0 %v7295_v52  ;;  %v1886_v2 = vld [vmem:[%s6778_s3 + $0x1f0] sm:$0xff]  ;;  %v7298_v52 = vand.u32 4294901760, %v7297_v12 }
 0x16d   :  { %3820 = vmatprep.subr.mxu1 %v5462_v42  ;;  %3740 = vmatpush3.msra.mxu0 %v7296_v25  ;;  %v7299_v42 = vand.u32 4294901760, %v5454_v54  ;;  %v6032_v25 = vand.u32 4294901760, %v1871_v27  ;;  %v1870_v12 = vld [vmem:[%s6778_s3 + $0x170] sm:$0xff]  ;;  %v7301_v54 = vand.u32 4294901760, %v5474_v15  ;;  %v7304_v15 = vand.u32 4294901760, %v5489_v20 }
 0x16e   :  { %3821 = vmatpush3.msra.mxu1 %v5479_v32  ;;  %2375 = vmatmul.mubr.f32.vlgmr.msra.gmra.mxu0 %v5930_v14  ;;  %v7300_v32 = vand.u32 4294901760, %v5460_v11  ;;  %v6037_v14 = vand.u32 4294901760, %v1886_v2  ;;  %v7303_v11 = vand.u32 4294901760, %v5477_v30  ;;  %v1868_v30 = vld [vmem:[%s6778_s3 + $0x160] sm:$0xff] }
 0x16f   :  { %3779 = vmatprep.subr.mxu0 %v7298_v52  ;;  %3822 = vmatprep.subr.mxu1 %v5498_v0  ;;  %v6046_v0 = vsub.f32 %v1887_v16, %v6021_v31  ;;  %v6063_v16 = vand.u32 4294901760, %v1870_v12 }
 0x170   :  { %3780 = vmatpush3.msra.mxu0 %v7299_v42  ;;  %2649 = vmatprep.mubr.f32.mxu0 %v5932_v29  ;;  %v1869_v29 = vld [vmem:[%s6778_s3 + $0x168] sm:$0xff]  ;;  %v6075_v20 = vsub.f32 %v1886_v2, %v6037_v14  ;;  %v7312_v2 = vand.u32 4294901760, %v7275_v19 }
 0x171   :  { %3823 = vmatpush3.msra.mxu1 %v5500_v35  ;;  %3781 = vmatprep.subr.mxu0 %v7300_v32  ;;  %7302 = vst [vmem:[#allocation23_spill] sm:$0xff] %v6046_v0  ;;  %v1885_v35 = vld [vmem:[%s6778_s3 + $0x1e8] sm:$0xff]  ;;  %7306 = vst [vmem:[#allocation6_spill] sm:$0xff] %v6063_v16  ;;  %v6978_v42 = vand.u32 4294901760, %v6046_v0  ;;  %v6083_v32 = vand.u32 4294901760, %v1869_v29  ;;  %v6105_v19 = vsub.f32 %v1870_v12, %v6063_v16  ;;  %v1866_v12 = vld [vmem:[%s6778_s3 + $0x150] sm:$0xff] }
 0x172   :  { %3824 = vmatprep.subr.mxu1 %v5515_v44  ;;  %3782 = vmatpush3.msra.mxu0 %v7301_v54  ;;  %v6061_v44 = vsub.f32 %v1871_v27, %v6032_v25  ;;  %7308 = vst [vmem:[#allocation8_spill] sm:$0xff] %v6075_v20  ;;  %v6077_v52 = vand.u32 4294901760, %v1885_v35  ;;  %v7310_v27 = vand.u32 4294901760, %v7274_v61  ;;  %v1867_v61 = vld [vmem:[%s6778_s3 + $0x158] sm:$0xff] }
 0x173   :  { %3825 = vmatpush3.msra.mxu1 %v5525_v48  ;;  %3783 = vmatprep.subr.mxu0 %v7303_v11  ;;  %v1884_v48 = vld [vmem:[%s6778_s3 + $0x1e0] sm:$0xff]  ;;  %7314 = vst [vmem:[#allocation15_spill] sm:$0xff] %v6105_v19 }
 0x174   :  { %3826 = vmatprep.subr.mxu1 %v5539_v36  ;;  %3784 = vmatpush3.msra.mxu0 %v7304_v15  ;;  %7305 = vst [vmem:[#allocation18_spill] sm:$0xff] %v6061_v44  ;;  %v7307_v36 = vand.u32 4294901760, %v7272_v59  ;;  %7309 = vst [vmem:[#allocation13_spill] sm:$0xff] %v6077_v52  ;;  %v7311_v59 = vld [vmem:[#allocation24_spill] sm:$0xff]  ;;  %v6092_v11 = vand.u32 4294901760, %v1884_v48 }
 0x175   :  { %3827 = vmatpush3.msra.mxu1 %v5541_v17  ;;  %v1883_v17 = vld [vmem:[%s6778_s3 + $0x1d8] sm:$0xff]  ;;  %v100_v54 = vsub.s32 2, %v7311_v59  ;;  %v104_v15 = vsub.s32 3, %v7311_v59  ;;  %v7319_v59 = vld [vmem:[#allocation33_spill] sm:$0xff] }
 0x176   :  { %3785 = vmatprep.subr.mxu0 %v7307_v36  ;;  %3828 = vmatprep.subr.mxu1 %v7273_v18  ;;  %v6094_v18 = vand.u32 4294901760, %v1868_v30  ;;  %v7313_v36 = vand.u32 4294901760, %v7277_v5  ;;  %v6117_v5 = vand.u32 4294901760, %v1883_v17 }
 0x177   :  { %3786 = vmatpush3.msra.mxu0 %v7310_v27  ;;  %3829 = vmatpush3.msra.mxu1 %v5612_v22  ;;  %v1882_v27 = vld [vmem:[%s6778_s3 + $0x1d0] sm:$0xff]  ;;  %v6139_v22 = vrot.slane %v7319_v59, %v100_v54  ;;  %v6156_v54 = vrot.slane %v7319_v59, %v104_v15  ;;  %v7330_v59 = vand.u32 4294901760, %v7284_v37 }
 0x178   :  { %3787 = vmatprep.subr.mxu0 %v7312_v2  ;;  %3830 = vmatprep.subr.mxu1 %v7276_v49  ;;  %v7315_v2 = vand.u32 4294901760, %v7278_v60  ;;  %v6115_v49 = vsub.f32 %v1885_v35, %v6077_v52  ;;  %v6131_v60 = vsub.f32 %v1869_v29, %v6083_v32  ;;  %v6133_v35 = vand.u32 4294901760, %v1867_v61 }
 0x179   :  { %3788 = vmatpush3.msra.mxu0 %v7313_v36  ;;  %3831 = vmatpush3.msra.mxu1 %v5648_v10  ;;  %v7317_v36 = vand.u32 4294901760, %v7279_v21  ;;  %v6128_v10 = vsub.f32 %v6046_v0, %v6978_v42  ;;  %v6145_v21 = vsub.f32 %v1884_v48, %v6092_v11  ;;  %v6148_v29 = vsub.f32 %v1868_v30, %v6094_v18  ;;  %v1865_v42 = vld [vmem:[%s6778_s3 + $0x148] sm:$0xff]  ;;  %v1880_v0 = vld [vmem:[%s6778_s3 + $0x1c0] sm:$0xff] }
 0x17a   :  { %3789 = vmatprep.subr.mxu0 %v7315_v2  ;;  %7316 = vst [vmem:[#allocation7_spill] sm:$0xff] %v6115_v49  ;;  %3832 = vmatprep.subr.mxu1 %v5681_v3  ;;  %7318 = vst [vmem:[#allocation10_spill] sm:$0xff] %v6131_v60  ;;  %v1881_v2 = vld [vmem:[%s6778_s3 + $0x1c8] sm:$0xff]  ;;  %v7320_v3 = vand.u32 4294901760, %v7280_v28  ;;  %v7324_v28 = vand.u32 4294901760, %v6061_v44  ;;  %v1864_v30 = vld [vmem:[%s6778_s3 + $0x140] sm:$0xff] }
 0x17b   :  { %3790 = vmatpush3.msra.mxu0 %v7317_v36  ;;  %3833 = vmatpush3.msra.mxu1 %v5697_v24  ;;  %7321 = vst [vmem:[#allocation9_spill] sm:$0xff] %v6145_v21  ;;  %7322 = vst [vmem:[#allocation12_spill] sm:$0xff] %v6148_v29  ;;  %v6150_v36 = vand.u32 4294901760, %v1882_v27  ;;  %v7323_v24 = vand.u32 4294901760, %v7281_v45  ;;  %v7326_v45 = vand.u32 4294901760, %v6075_v20 }
 0x17c   :  { %3791 = vmatprep.subr.mxu0 %v7320_v3  ;;  %3834 = vmatprep.subr.mxu1 %v5716_v4  ;;  %v6164_v48 = vsub.f32 %v6061_v44, %v7324_v28  ;;  %v6167_v3 = vand.u32 4294901760, %v1866_v12  ;;  %v7325_v4 = vand.u32 4294901760, %v7282_v63  ;;  %v6184_v28 = vand.u32 4294901760, %v1881_v2 }
 0x17d   :  { %3792 = vmatpush3.msra.mxu0 %v7323_v24  ;;  %3835 = vmatpush3.msra.mxu1 %v5725_v40  ;;  %v6178_v15 = vsub.f32 %v6075_v20, %v7326_v45  ;;  %v6182_v24 = vsub.f32 %v1883_v17, %v6117_v5  ;;  %v7328_v40 = vand.u32 4294901760, %v7283_v58  ;;  %v6195_v45 = vsub.f32 %v1867_v61, %v6133_v35  ;;  %v1879_v61 = vld [vmem:[%s6778_s3 + $0x1b8] sm:$0xff] }
 0x17e   :  { %3793 = vmatprep.subr.mxu0 %v7325_v4  ;;  %3836 = vmatprep.subr.mxu1 %v5740_v46  ;;  %v6983_v4 = vand.u32 4294901760, %v6131_v60  ;;  %v6197_v17 = vand.u32 4294901760, %v1865_v42  ;;  %v6205_v58 = vsub.f32 %v1882_v27, %v6150_v36  ;;  %v2877_v37 = vand.u32 4294901760, %v6164_v48 }
 0x17f   :  { %7327 = vst [vmem:[#allocation11_spill] sm:$0xff] %v6182_v24  ;;  %3794 = vmatpush3.msra.mxu0 %v7328_v40  ;;  %7329 = vst [vmem:[#allocation14_spill] sm:$0xff] %v6195_v45  ;;  %3837 = vmatpush3.msra.mxu1 %v5751_v34  ;;  %v6207_v40 = vand.u32 4294901760, %v1880_v0  ;;  %v7332_v34 = vand.u32 4294901760, %v7285_v47  ;;  %v6222_v27 = vsub.f32 %v1866_v12, %v6167_v3  ;;  %v6224_v46 = vand.u32 4294901760, %v1864_v30  ;;  %v1863_v12 = vld [vmem:[%s6778_s3 + $0x138] sm:$0xff] }
 0x180   :  { %3795 = vmatprep.subr.mxu0 %v7330_v59  ;;  %7331 = vst [vmem:[#allocation21_spill] sm:$0xff] %v6205_v58  ;;  %3838 = vmatprep.subr.mxu1 %v5762_v50  ;;  %v7333_v59 = vand.u32 4294901760, %v6105_v19  ;;  %v7335_v20 = vand.u32 4294901760, %v7286_v33  ;;  %v2996_v50 = vand.u32 4294901760, %v6178_v15  ;;  %v7336_v47 = vand.u32 4294901760, %v6115_v49 }
 0x181   :  { %3796 = vmatpush3.msra.mxu0 %v7332_v34  ;;  %7334 = vst [vmem:[#allocation19_spill] sm:$0xff] %v6222_v27  ;;  %3839 = vmatpush3.msra.mxu1 %v5775_v38  ;;  %v7338_v38 = vand.u32 4294901760, %v7287_v7  ;;  %v6248_v33 = vsub.f32 %v6131_v60, %v6983_v4  ;;  %v6252_v15 = vsub.f32 %v1865_v42, %v6197_v17  ;;  %v7341_v7 = vand.u32 4294901760, %v6145_v21 }
 0x182   :  { %v6219_v63 = vsub.f32 %v6105_v19, %v7333_v59  ;;  %3797 = vmatprep.subr.mxu0 %v7335_v20  ;;  %v6233_v48 = vsub.f32 %v6115_v49, %v7336_v47  ;;  %v6237_v59 = vsub.f32 %v1881_v2, %v6184_v28  ;;  %3840 = vmatprep.subr.mxu1 %v5786_v57  ;;  %v6254_v2 = vand.u32 4294901760, %v1879_v61  ;;  %v1878_v47 = vld [vmem:[%s6778_s3 + $0x1b0] sm:$0xff] }
 0x183   :  { %3798 = vmatpush3.msra.mxu0 %v7338_v38  ;;  %7339 = vst [vmem:[#allocation20_spill] sm:$0xff] %v6252_v15  ;;  %3841 = vmatpush3.msra.mxu1 %v5799_v43  ;;  %v7340_v57 = vand.u32 4294901760, %v5760_v56  ;;  %v6265_v38 = vsub.f32 %v6145_v21, %v7341_v7  ;;  %v7342_v4 = vand.u32 4294901760, %v6148_v29  ;;  %v6986_v20 = vand.u32 4294901760, %v6205_v58 }
 0x184   :  { %7337 = vst [vmem:[#allocation27_spill] sm:$0xff] %v6237_v59  ;;  %v6274_v34 = vsub.f32 %v1880_v0, %v6207_v40  ;;  %3842 = vmatprep.subr.mxu1 %v5812_v55  ;;  %v7344_v56 = vand.u32 4294901760, %v5773_v51  ;;  %v2884_v43 = vand.u32 4294901760, %v6219_v63  ;;  %v6282_v7 = vsub.f32 %v1864_v30, %v6224_v46  ;;  %v1862_v30 = vld [vmem:[%s6778_s3 + $0x130] sm:$0xff] }
 0x185   :  { %3799 = vmatprep.subr.mxu0 %v7340_v57  ;;  %v6270_v42 = vsub.f32 %v6148_v29, %v7342_v4  ;;  %v6284_v21 = vand.u32 4294901760, %v1863_v12  ;;  %3843 = vmatpush3.msra.mxu1 %v5822_v41  ;;  %v7346_v4 = vand.u32 4294901760, %v5784_v9  ;;  %v3003_v0 = vand.u32 4294901760, %v6233_v48  ;;  %v1877_v57 = vld [vmem:[%s6778_s3 + $0x1a8] sm:$0xff] }
 0x186   :  { %7343 = vst [vmem:[#allocation25_spill] sm:$0xff] %v6274_v34  ;;  %3800 = vmatpush3.msra.mxu0 %v7344_v56  ;;  %7345 = vst [vmem:[#allocation29_spill] sm:$0xff] %v6282_v7  ;;  %v7347_v55 = vand.u32 4294901760, %v6182_v24  ;;  %v6296_v56 = vand.u32 4294901760, %v1878_v47  ;;  %3844 = vmatprep.subr.mxu1 %v5832_v8  ;;  %v7348_v9 = vand.u32 4294901760, %v7288_v23  ;;  %v2891_v41 = vand.u32 4294901760, %v6248_v33 }
 0x187   :  { %3801 = vmatprep.subr.mxu0 %v7346_v4  ;;  %v7349_v48 = vand.u32 4294901760, %v6195_v45  ;;  %v6312_v63 = vsub.f32 %v1879_v61, %v6254_v2  ;;  %3845 = vmatpush3.msra.mxu1 %v5842_v26  ;;  %v7351_v8 = vand.u32 4294901760, %v5810_v39  ;;  %v3010_v23 = vand.u32 4294901760, %v6265_v38  ;;  %v1876_v61 = vld [vmem:[%s6778_s3 + $0x1a0] sm:$0xff] }
 0x188   :  { %v6293_v51 = vsub.f32 %v6182_v24, %v7347_v55  ;;  %3802 = vmatpush3.msra.mxu0 %v7348_v9  ;;  %v2898_v33 = vand.u32 4294901760, %v6270_v42  ;;  %v6325_v9 = vsub.f32 %v6205_v58, %v6986_v20  ;;  %2755 = vmatmul.mubr.f32.vlgmr.msra.gmra.mxu1 %v5927_v6  ;;  %v7352_v26 = vand.u32 4294901760, %v6128_v10  ;;  %v1860_v10 = vld [vmem:[%s6778_s3 + $0x120] sm:$0xff]  ;;  %v1068_v24 = vpop.f32.mrf.mxu0 }
 0x189   :  { %v6308_v4 = vsub.f32 %v6195_v45, %v7349_v48  ;;  %7350 = vst [vmem:[#allocation26_spill] sm:$0xff] %v6312_v63  ;;  %3803 = vmatprep.subr.mxu0 %v7351_v8  ;;  %v1861_v48 = vld [vmem:[%s6778_s3 + $0x128] sm:$0xff]  ;;  %v7353_v39 = vand.u32 4294901760, %v6222_v27  ;;  %v6341_v8 = vsub.f32 %v1863_v12, %v6284_v21  ;;  %v6343_v20 = vand.u32 4294901760, %v1862_v30  ;;  %v7365_v45 = vld [vmem:[#allocation28_spill] sm:$0xff] }
 0x18a   :  { %3884 = vmatprep.subr.mxu1 %v7352_v26  ;;  %v7355_v26 = vand.u32 4294901760, %v7290_v13  ;;  %v7356_v42 = vand.u32 4294901760, %v6237_v59  ;;  %v6360_v55 = vsub.f32 %v1878_v47, %v6296_v56  ;;  %v7358_v58 = vand.u32 4294901760, %v7291_v53  ;;  %v1875_v47 = vld [vmem:[%s6778_s3 + $0x198] sm:$0xff] }
 0x18b   :  { %v6337_v38 = vsub.f32 %v6222_v27, %v7353_v39  ;;  %7354 = vst [vmem:[#allocation30_spill] sm:$0xff] %v6341_v8  ;;  %3885 = vmatpush3.msra.mxu1 %v2877_v37  ;;  %v3017_v39 = vand.u32 4294901760, %v6293_v51  ;;  %v6362_v27 = vand.u32 4294901760, %v1877_v57  ;;  %v2905_v13 = vand.u32 4294901760, %v6308_v4 }
 0x18c   :  { %3804 = vmatpush3.msra.mxu0 %v7355_v26  ;;  %v6357_v12 = vsub.f32 %v6237_v59, %v7356_v42  ;;  %7357 = vst [vmem:[#allocation31_spill] sm:$0xff] %v6360_v55  ;;  %3886 = vmatprep.subr.mxu1 %v2996_v50  ;;  %v7359_v37 = vand.u32 4294901760, %v6252_v15  ;;  %v6373_v42 = vand.u32 4294901760, %v1861_v48  ;;  %v7360_v59 = vand.u32 4294901760, %v7292_v1  ;;  %v1859_v26 = vld [vmem:[%s6778_s3 + $0x118] sm:$0xff] }
 0x18d   :  { %3805 = vmatprep.subr.mxu0 %v7358_v58  ;;  %3887 = vmatpush3.msra.mxu1 %v2884_v43  ;;  %v3024_v53 = vand.u32 4294901760, %v6325_v9  ;;  %v7361_v58 = vand.u32 4294901760, %v6274_v34  ;;  %v6386_v4 = vand.u32 4294901760, %v1876_v61  ;;  %v2912_v1 = vand.u32 4294901760, %v6337_v38  ;;  %v7368_v9 = vld [vmem:[#allocation32_spill] sm:$0xff] }
 0x18e   :  { %v6370_v51 = vsub.f32 %v6252_v15, %v7359_v37  ;;  %3806 = vmatpush3.msra.mxu0 %v7360_v59  ;;  %v6388_v37 = vand.u32 4294901760, %v1860_v10  ;;  %v7362_v15 = vand.u32 4294901760, %v7293_v62  ;;  %3888 = vmatprep.subr.mxu1 %v3003_v0  ;;  %v7363_v59 = vand.u32 4294901760, %v6282_v7  ;;  %v1873_v0 = vld [vmem:[%s6778_s3 + $0x188] sm:$0xff] }
 0x18f   :  { %v6384_v50 = vsub.f32 %v6274_v34, %v7361_v58  ;;  %v6403_v58 = vsub.f32 %v1862_v30, %v6343_v20  ;;  %v1874_v34 = vld [vmem:[%s6778_s3 + $0x190] sm:$0xff]  ;;  %v7366_v62 = vand.u32 4294901760, %v7365_v45  ;;  %3889 = vmatpush3.msra.mxu1 %v2891_v41  ;;  %v6413_v38 = vsub.f32 %v1877_v57, %v6362_v27 }
 0x190   :  { %3807 = vmatprep.subr.mxu0 %v7362_v15  ;;  %v6399_v43 = vsub.f32 %v6282_v7, %v7363_v59  ;;  %v3031_v15 = vand.u32 4294901760, %v6357_v12  ;;  %v6415_v59 = vand.u32 4294901760, %v1875_v47  ;;  %v1858_v30 = vld [vmem:[%s6778_s3 + $0x110] sm:$0xff]  ;;  %v7369_v7 = vand.u32 4294901760, %v7368_v9  ;;  %3890 = vmatprep.subr.mxu1 %v3010_v23  ;;  %v7373_v9 = vld [vmem:[#allocation17_spill] sm:$0xff] }
 0x191   :  { %7364 = vst [vmem:[#allocation16_spill] sm:$0xff] %v6403_v58  ;;  %3808 = vmatpush3.msra.mxu0 %v7366_v62  ;;  %v2919_v45 = vand.u32 4294901760, %v6370_v51  ;;  %v7370_v41 = vand.u32 4294901760, %v6312_v63  ;;  %v6429_v57 = vsub.f32 %v1861_v48, %v6373_v42  ;;  %v6431_v62 = vand.u32 4294901760, %v1859_v26  ;;  %3891 = vmatpush3.msra.mxu1 %v2898_v33 }
 0x192   :  { %7367 = vst [vmem:[#allocation22_spill] sm:$0xff] %v6415_v59  ;;  %3809 = vmatprep.subr.mxu0 %v7369_v7  ;;  %v7374_v7 = vand.u32 4294901760, %v7373_v9  ;;  %v3038_v23 = vand.u32 4294901760, %v6384_v50  ;;  %v6440_v51 = vsub.f32 %v1876_v61, %v6386_v4  ;;  %v6445_v48 = vand.u32 4294901760, %v1874_v34  ;;  %3892 = vmatprep.subr.mxu1 %v3017_v39 }
 0x193   :  { %v6426_v12 = vsub.f32 %v6312_v63, %v7370_v41  ;;  %7371 = vst [vmem:[#allocation24_spill] sm:$0xff] %v6429_v57  ;;  %7372 = vst [vmem:[#allocation33_spill] sm:$0xff] %v6431_v62  ;;  %v6443_v41 = vsub.f32 %v1860_v10, %v6388_v37  ;;  %v1857_v63 = vld [vmem:[%s6778_s3 + $0x108] sm:$0xff]  ;;  %v2926_v33 = vand.u32 4294901760, %v6399_v43  ;;  %v7377_v50 = vand.u32 4294901760, %v6341_v8  ;;  %3893 = vmatpush3.msra.mxu1 %v2905_v13 }
 0x194   :  { %3810 = vmatpush3.msra.mxu0 %v7374_v7  ;;  %7375 = vst [vmem:[#allocation28_spill] sm:$0xff] %v6440_v51  ;;  %v6459_v9 = vand.u32 4294901760, %v1858_v30  ;;  %v1872_v7 = vld [vmem:[%s6778_s3 + $0x180] sm:$0xff]  ;;  %v6474_v10 = vand.u32 4294901760, %v1873_v0  ;;  %v6485_v29 = vand.u32 4294901760, %v1857_v63  ;;  %3894 = vmatprep.subr.mxu1 %v3024_v53  ;;  %v6491_v19 = vsub.f32 %v1874_v34, %v6445_v48 }
 0x195   :  { %7376 = vst [vmem:[#allocation32_spill] sm:$0xff] %v6443_v41  ;;  %2651 = vmatmul.mubr.f32.vlgmr.msra.gmra.mxu0 %v5927_v6  ;;  %3849 = vmatprep.subr.mxu0 %v6021_v31  ;;  %v6456_v61 = vsub.f32 %v6341_v8, %v7377_v50  ;;  %v7379_v6 = vand.u32 4294901760, %v6360_v55  ;;  %v6472_v50 = vsub.f32 %v1875_v47, %v6415_v59  ;;  %v1856_v8 = vld [vmem:[%s6778_s3 + $0x100] sm:$0xff]  ;;  %v3045_v39 = vand.u32 4294901760, %v6426_v12  ;;  %v1070_v47 = vpop.f32.mrf.mxu0  ;;  %s4087_s3 = smov [#allocation3]  }
 0x196   :  { %7378 = vst [vmem:[#allocation17_spill] sm:$0xff] %v6459_v9  ;;  %3850 = vmatpush3.msra.mxu0 %v6032_v25  ;;  %v6493_v12 = vand.u32 4294901760, %v1872_v7  ;;  %3895 = vmatpush3.msra.mxu1 %v2912_v1  ;;  %v7380_v60 = vand.u32 4294901760, %v6403_v58  ;;  %v6501_v44 = vsub.f32 %v1858_v30, %v6459_v9  ;;  %v6503_v49 = vand.u32 4294901760, %v1856_v8  ;;  %s3630_s30 = sshll.u32 %s4087_s3, 4  ;;  %s3631_s30 = int_to_ptr.vmem [resolvable:$true] %s3630_s30 }
 0x197   :  { %v6468_v43 = vsub.f32 %v6360_v55, %v7379_v6  ;;  %3851 = vmatprep.subr.mxu0 %v6037_v14  ;;  %v6483_v6 = vsub.f32 %v1859_v26, %v6431_v62  ;;  %v1300_v55 = vpop.f32.mrf.mxu1  ;;  %v2933_v26 = vand.u32 4294901760, %v6456_v61  ;;  %v1437_v13 = vpop.f32.mrf.mxu0  ;;  %3896 = vmatprep.subr.mxu1 %v3031_v15  ;;  %v7381_v1 = vand.u32 4294901760, %v6413_v38  ;;  %s4063_s6 = scalar_lea.vmem %s3631_s30, 128  ;;  %p4068_p1 = scmp.lt.s32.totalorder %s3631_s30, %s3631_s30 }
 0x198   :  { %3852 = vmatpush3.msra.mxu0 %v6063_v16  ;;  %v2939_v53 = vsub.f32 %v6403_v58, %v7380_v60  ;;  %v6512_v16 = vsub.f32 %v1873_v0, %v6474_v10  ;;  %v1069_v60 = vadd.f32 %v1068_v24, %v6139_v22  ;;  %3897 = vmatpush3.msra.mxu1 %v2919_v45  ;;  %v7382_v15 = vand.u32 4294901760, %v6429_v57  ;;  %p4064_p0 = scmp.ne.s32.totalorder %s3631_s30, %s4063_s6  ;;  %p4069_p2 = scmp.lt.s32.totalorder %s4063_s6, %s4063_s6 }
 0x199   :  { %3853 = vmatprep.subr.mxu0 %v6077_v52  ;;  %v3052_v34 = vand.u32 4294901760, %v6468_v43  ;;  %v3058_v52 = vsub.f32 %v6413_v38, %v7381_v1  ;;  %v6521_v58 = vsub.f32 %v1857_v63, %v6485_v29  ;;  %v1302_v1 = vpop.f32.mrf.mxu1  ;;  %3898 = vmatprep.subr.mxu1 %v3038_v23  ;;  %v7383_v0 = vand.u32 4294901760, %v6440_v51 }
 0x19a   :  { %3854 = vmatpush3.msra.mxu0 %v6083_v32  ;;  %v2946_v30 = vsub.f32 %v6429_v57, %v7382_v15  ;;  %v7384_v24 = vand.u32 4294901760, %v6443_v41  ;;  %v6532_v15 = vsub.f32 %v1872_v7, %v6493_v12  ;;  %v1071_v63 = vadd.f32 %v1070_v47, %v6156_v54  ;;  %3899 = vmatpush3.msra.mxu1 %v2926_v33  ;;  %p4070_p3 = por %p4069_p2, %p4068_p1 }
 0x19b   :  { %3855 = vmatprep.subr.mxu0 %v6092_v11  ;;  %v3065_v22 = vsub.f32 %v6440_v51, %v7383_v0  ;;  %v2940_v23 = vand.u32 4294901760, %v2939_v53  ;;  %v6538_v57 = vsub.f32 %v1856_v8, %v6503_v49  ;;  %v1439_v0 = vpop.f32.mrf.mxu0  ;;  %v1543_v51 = vpop.f32.mrf.mxu1  ;;  %3900 = vmatprep.subr.mxu1 %v3045_v39  ;;  %v7385_v7 = vand.u32 4294901760, %v6472_v50 }
 0x19c   :  { %3856 = vmatpush3.msra.mxu0 %v6094_v18  ;;  %v2953_v45 = vsub.f32 %v6443_v41, %v7384_v24  ;;  %v3059_v24 = vand.u32 4294901760, %v3058_v52  ;;  %v1301_v33 = vadd.f32 %v1300_v55, %v1069_v60  ;;  %3901 = vmatpush3.msra.mxu1 %v2933_v26  ;;  %v2947_v47 = vand.u32 4294901760, %v2946_v30  ;;  %p4071_p4 = pnand %p4070_p3, %p4064_p0 }
 0x19d   :  { %3857 = vmatprep.subr.mxu0 %v6117_v5  ;;  %v3072_v61 = vsub.f32 %v6472_v50, %v7385_v7  ;;  %v7386_v8 = vand.u32 4294901760, %v6483_v6  ;;  %v1711_v43 = vpop.f32.mrf.mxu0  ;;  %3902 = vmatprep.subr.mxu1 %v3052_v34  ;;  %v3066_v52 = vand.u32 4294901760, %v3065_v22  ;;  %v7387_v7 = vand.u32 4294901760, %v6491_v19  ;;  %v1545_v54 = vpop.f32.mrf.mxu1 }
 0x19e   :  { %3858 = vmatpush3.msra.mxu0 %v6133_v35  ;;  %v2954_v41 = vand.u32 4294901760, %v2953_v45  ;;  %v7032_v26 = vand.u32 4294901760, %v6532_v15  ;;  %v1303_v60 = vadd.f32 %v1302_v1, %v1071_v63  ;;  %v1438_v30 = vadd.f32 %v1437_v13, %v1301_v33  ;;  %3903 = vmatpush3.msra.mxu1 %v2940_v23 }
 0x19f   :  { %3859 = vmatprep.subr.mxu0 %v6150_v36  ;;  %v2960_v53 = vsub.f32 %v6483_v6, %v7386_v8  ;;  %v3079_v55 = vsub.f32 %v6491_v19, %v7387_v7  ;;  %v7388_v8 = vand.u32 4294901760, %v6501_v44  ;;  %v7031_v34 = vand.u32 4294901760, %v6538_v57  ;;  %3904 = vmatprep.subr.mxu1 %v3059_v24 }
 0x1a0   :  { %3860 = vmatpush3.msra.mxu0 %v6167_v3  ;;  %v3073_v22 = vand.u32 4294901760, %v3072_v61  ;;  %v7389_v45 = vand.u32 4294901760, %v6512_v16  ;;  %v1440_v1 = vadd.f32 %v1439_v0, %v1303_v60  ;;  %v1544_v13 = vadd.f32 %v1543_v51, %v1438_v30  ;;  %3905 = vmatpush3.msra.mxu1 %v2947_v47 }
 0x1a1   :  { %3861 = vmatprep.subr.mxu0 %v6184_v28  ;;  %v2967_v39 = vsub.f32 %v6501_v44, %v7388_v8  ;;  %v2961_v63 = vand.u32 4294901760, %v2960_v53  ;;  %v7390_v23 = vand.u32 4294901760, %v6521_v58  ;;  %v1713_v8 = vpop.f32.mrf.mxu0  ;;  %3906 = vmatprep.subr.mxu1 %v3066_v52  ;;  %v3080_v24 = vand.u32 4294901760, %v3079_v55  ;;  %v1815_v53 = vpop.f32.mrf.mxu1 }
 0x1a2   :  { %3862 = vmatpush3.msra.mxu0 %v6197_v17  ;;  %v3086_v7 = vsub.f32 %v6512_v16, %v7389_v45  ;;  %v3093_v61 = vsub.f32 %v6532_v15, %v7032_v26  ;;  %v1546_v45 = vadd.f32 %v1545_v54, %v1440_v1  ;;  %v1712_v0 = vadd.f32 %v1711_v43, %v1544_v13  ;;  %v7412_v26 = vld [vmem:[#allocation31_spill] sm:$0xff] }
 0x1a3   :  { %3863 = vmatprep.subr.mxu0 %v6207_v40  ;;  %v2974_v33 = vsub.f32 %v6521_v58, %v7390_v23  ;;  %3907 = vmatpush3.msra.mxu1 %v2954_v41  ;;  %v2968_v51 = vand.u32 4294901760, %v2967_v39  ;;  %v2981_v47 = vsub.f32 %v6538_v57, %v7031_v34  ;;  %v1817_v43 = vpop.f32.mrf.mxu1  ;;  %v7411_v34 = vld [vmem:[#allocation30_spill] sm:$0xff] }
 0x1a4   :  { %3864 = vmatpush3.msra.mxu0 %v6224_v46  ;;  %3908 = vmatprep.subr.mxu1 %v3073_v22  ;;  %v3087_v52 = vand.u32 4294901760, %v3086_v7  ;;  %v1714_v55 = vadd.f32 %v1713_v8, %v1546_v45  ;;  %v1816_v60 = vadd.f32 %v1815_v53, %v1712_v0  ;;  %v3094_v41 = vand.u32 4294901760, %v3093_v61  ;;  %v7392_v61 = vld [vmem:[#allocation6_spill] sm:$0xff]  ;;  %v7393_v0 = vld [vmem:[#allocation13_spill] sm:$0xff] }
 0x1a5   :  { %3865 = vmatprep.subr.mxu0 %v6254_v2  ;;  %3909 = vmatpush3.msra.mxu1 %v2961_v63  ;;  %v2975_v54 = vand.u32 4294901760, %v2974_v33  ;;  %v2982_v22 = vand.u32 4294901760, %v2981_v47  ;;  %v7394_v47 = vld [vmem:[#allocation23_spill] sm:$0xff] }
 0x1a6   :  { %3866 = vmatpush3.msra.mxu0 %v6284_v21  ;;  %3910 = vmatprep.subr.mxu1 %v3080_v24  ;;  %v1822_v39 = vmax.f32 %v1816_v60, 0.0  ;;  %v1818_v30 = vadd.f32 %v1817_v43, %v1714_v55  ;;  %v7396_v55 = vld [vmem:[#allocation8_spill] sm:$0xff]  ;;  %v7397_v60 = vld [vmem:[#allocation15_spill] sm:$0xff]  ;;  %v7399_v43 = vld [vmem:[#allocation10_spill] sm:$0xff] }
 0x1a7   :  { %3867 = vmatprep.subr.mxu0 %v6296_v56  ;;  %3911 = vmatpush3.msra.mxu1 %v2968_v51 }
 0x1a8   :  { %3868 = vmatpush3.msra.mxu0 %v6343_v20  ;;  %3912 = vmatprep.subr.mxu1 %v3087_v52  ;;  %v6581_v7 = vand.u32 4294901760, %v1822_v39  ;;  %v1823_v1 = vmax.f32 %v1818_v30, 0.0  ;;  %v7395_v52 = vld [vmem:[#allocation18_spill] sm:$0xff]  ;;  %v7402_v30 = vld [vmem:[#allocation11_spill] sm:$0xff] }
 0x1a9   :  { %3869 = vmatprep.subr.mxu0 %v6362_v27  ;;  %3913 = vmatpush3.msra.mxu1 %v2975_v54  ;;  %v7398_v54 = vld [vmem:[#allocation7_spill] sm:$0xff] }
 0x1aa   :  { %3870 = vmatpush3.msra.mxu0 %v6373_v42  ;;  %7391 = vst [vmem:[#allocation34_spill] sm:$0xff] %v6581_v7  ;;  %3914 = vmatprep.subr.mxu1 %v3094_v41  ;;  %v6586_v13 = vsub.f32 %v1822_v39, %v6581_v7  ;;  %v6588_v63 = vand.u32 4294901760, %v1823_v1  ;;  %v7400_v41 = vld [vmem:[#allocation9_spill] sm:$0xff]  ;;  %v7401_v39 = vld [vmem:[#allocation12_spill] sm:$0xff] }
 0x1ab   :  { %3871 = vmatprep.subr.mxu0 %v6386_v4  ;;  %3915 = vmatpush3.msra.mxu1 %v2982_v22  ;;  %v7403_v22 = vld [vmem:[#allocation14_spill] sm:$0xff] }
 0x1ac   :  { %3872 = vmatpush3.msra.mxu0 %v6388_v37  ;;  %3954 = vmatprep.subr.mxu1 %v6021_v31  ;;  %v7033_v23 = vand.u32 4294901760, %v6586_v13  ;;  %v2857_v33 = vsub.f32 %v1823_v1, %v6588_v63  ;;  %v7404_v1 = vld [vmem:[#allocation21_spill] sm:$0xff] }
 0x1ad   :  { %3873 = vmatprep.subr.mxu0 %v6415_v59  ;;  %3097 = vmatprep.mubr.f32.mxu1 %v6588_v63 }
 0x1ae   :  { %3874 = vmatpush3.msra.mxu0 %v6431_v62  ;;  %3099 = vmatmul.mubr.f32.vlgmr.msra.gmra.mxu1 %v6581_v7  ;;  %v2858_v8 = vand.u32 4294901760, %v2857_v33  ;;  %v2865_v24 = vsub.f32 %v6586_v13, %v7033_v23  ;;  %v7413_v23 = vld [vmem:[#allocation16_spill] sm:$0xff] }
 0x1af   :  { %3875 = vmatprep.subr.mxu0 %v6445_v48  ;;  %3955 = vmatpush3.msra.mxu1 %v6032_v25  ;;  %v7414_v7 = vld [vmem:[#allocation24_spill] sm:$0xff] }
 0x1b0   :  { %3876 = vmatpush3.msra.mxu0 %v6459_v9  ;;  %3956 = vmatprep.subr.mxu1 %v6037_v14  ;;  %v2859_v45 = vsub.f32 %v2857_v33, %v2858_v8  ;;  %v2866_v53 = vand.u32 4294901760, %v2865_v24  ;;  %v7407_v24 = vld [vmem:[#allocation20_spill] sm:$0xff] }
 0x1b1   :  { %3877 = vmatprep.subr.mxu0 %v6474_v10  ;;  %3957 = vmatpush3.msra.mxu1 %v7392_v61 }
 0x1b2   :  { %3878 = vmatpush3.msra.mxu0 %v6485_v29  ;;  %3341 = vmatprep.mubr.f32.mxu1 %v2858_v8  ;;  %v2860_v51 = vand.u32 4294901760, %v2859_v45  ;;  %v7406_v8 = vld [vmem:[#allocation27_spill] sm:$0xff]  ;;  %v7408_v45 = vld [vmem:[#allocation25_spill] sm:$0xff] }
 0x1b3   :  { %3958 = vmatprep.subr.mxu1 %v7393_v0  ;;  %3879 = vmatprep.subr.mxu0 %v6493_v12 }
 0x1b4   :  { %3959 = vmatpush3.msra.mxu1 %v6083_v32  ;;  %3880 = vmatpush3.msra.mxu0 %v6503_v49 }
 0x1b5   :  { %3960 = vmatprep.subr.mxu1 %v6092_v11  ;;  %3919 = vmatprep.subr.mxu0 %v7394_v47 }
 0x1b6   :  { %3961 = vmatpush3.msra.mxu1 %v6094_v18  ;;  %2861 = vmatprep.mubr.f32.mxu0 %v2860_v51  ;;  %v7409_v51 = vld [vmem:[#allocation29_spill] sm:$0xff] }
 0x1b7   :  { %3962 = vmatprep.subr.mxu1 %v6117_v5  ;;  %2867 = vmatmul.mubr.f32.vlgmr.msra.gmra.mxu0 %v2866_v53  ;;  %v7410_v53 = vld [vmem:[#allocation26_spill] sm:$0xff] }
 0x1b8   :  { %3920 = vmatpush3.msra.mxu0 %v7395_v52  ;;  %3963 = vmatpush3.msra.mxu1 %v6133_v35 }
 0x1b9   :  { %3921 = vmatprep.subr.mxu0 %v7396_v55  ;;  %3234 = vmatprep.mubr.f32.mxu0 %v2857_v33  ;;  %v7405_v33 = vld [vmem:[#allocation19_spill] sm:$0xff] }
 0x1ba   :  { %3964 = vmatprep.subr.mxu1 %v6150_v36  ;;  %3922 = vmatpush3.msra.mxu0 %v7397_v60 }
 0x1bb   :  { %3965 = vmatpush3.msra.mxu1 %v6167_v3  ;;  %3923 = vmatprep.subr.mxu0 %v7398_v54 }
 0x1bc   :  { %3966 = vmatprep.subr.mxu1 %v6184_v28  ;;  %3924 = vmatpush3.msra.mxu0 %v7399_v43 }
 0x1bd   :  { %3967 = vmatpush3.msra.mxu1 %v6197_v17  ;;  %3925 = vmatprep.subr.mxu0 %v7400_v41 }
 0x1be   :  { %3968 = vmatprep.subr.mxu1 %v6207_v40  ;;  %3926 = vmatpush3.msra.mxu0 %v7401_v39 }
 0x1bf   :  { %3969 = vmatpush3.msra.mxu1 %v6224_v46  ;;  %3927 = vmatprep.subr.mxu0 %v7402_v30 }
 0x1c0   :  { %3970 = vmatprep.subr.mxu1 %v6254_v2  ;;  %3928 = vmatpush3.msra.mxu0 %v7403_v22 }
 0x1c1   :  { %3971 = vmatpush3.msra.mxu1 %v6284_v21  ;;  %3929 = vmatprep.subr.mxu0 %v7404_v1 }
 0x1c2   :  { %3972 = vmatprep.subr.mxu1 %v6296_v56  ;;  %3930 = vmatpush3.msra.mxu0 %v7405_v33 }
 0x1c3   :  { %3973 = vmatpush3.msra.mxu1 %v6343_v20  ;;  %3931 = vmatprep.subr.mxu0 %v7406_v8 }
 0x1c4   :  { %3974 = vmatprep.subr.mxu1 %v6362_v27  ;;  %3932 = vmatpush3.msra.mxu0 %v7407_v24 }
 0x1c5   :  { %3975 = vmatpush3.msra.mxu1 %v6373_v42  ;;  %3933 = vmatprep.subr.mxu0 %v7408_v45 }
 0x1c6   :  { %3976 = vmatprep.subr.mxu1 %v6386_v4  ;;  %3934 = vmatpush3.msra.mxu0 %v7409_v51 }
 0x1c7   :  { %3977 = vmatpush3.msra.mxu1 %v6388_v37  ;;  %3935 = vmatprep.subr.mxu0 %v7410_v53 }
 0x1c8   :  { %3978 = vmatprep.subr.mxu1 %v6415_v59  ;;  %3936 = vmatpush3.msra.mxu0 %v7411_v34  ;;  %v7415_v59 = vld [vmem:[#allocation28_spill] sm:$0xff] }
 0x1c9   :  { %3979 = vmatpush3.msra.mxu1 %v6431_v62  ;;  %3937 = vmatprep.subr.mxu0 %v7412_v26  ;;  %v7416_v62 = vld [vmem:[#allocation32_spill] sm:$0xff] }
 0x1ca   :  { %3980 = vmatprep.subr.mxu1 %v6445_v48  ;;  %3938 = vmatpush3.msra.mxu0 %v7413_v23 }
 0x1cb   :  { %3981 = vmatpush3.msra.mxu1 %v6459_v9  ;;  %3939 = vmatprep.subr.mxu0 %v6413_v38  ;;  %v7417_v9 = vand.u32 4294901760, %v6586_v13 }
 0x1cc   :  { %3982 = vmatprep.subr.mxu1 %v6474_v10  ;;  %3940 = vmatpush3.msra.mxu0 %v7414_v7 }
 0x1cd   :  { %3983 = vmatpush3.msra.mxu1 %v6485_v29  ;;  %3941 = vmatprep.subr.mxu0 %v7415_v59 }
 0x1ce   :  { %3984 = vmatprep.subr.mxu1 %v6493_v12  ;;  %3942 = vmatpush3.msra.mxu0 %v7416_v62 }
 0x1cf   :  { %3985 = vmatpush3.msra.mxu1 %v6503_v49  ;;  %3943 = vmatprep.subr.mxu0 %v6472_v50 }
 0x1d0   :  { %3345 = vmatmul.mubr.f32.vlgmr.msra.gmra.mxu1 %v7417_v9  ;;  %4024 = vmatprep.subr.mxu1 %v6021_v31  ;;  %v7419_v31 = vand.u32 4294901760, %v7395_v52  ;;  %v7437_v9 = vld [vmem:[#allocation33_spill] sm:$0xff] }
 0x1d1   :  { %3944 = vmatpush3.msra.mxu0 %v6483_v6  ;;  %4025 = vmatpush3.msra.mxu1 %v6032_v25  ;;  %v7418_v25 = vand.u32 4294901760, %v7394_v47 }
 0x1d2   :  { %3615 = vmatprep.mubr.f32.mxu1 %v6588_v63  ;;  %3945 = vmatprep.subr.mxu0 %v6491_v19 }
 0x1d3   :  { %4026 = vmatprep.subr.mxu1 %v6037_v14  ;;  %3946 = vmatpush3.msra.mxu0 %v6501_v44  ;;  %v7420_v14 = vand.u32 4294901760, %v7396_v55 }
 0x1d4   :  { %4027 = vmatpush3.msra.mxu1 %v7392_v61  ;;  %3947 = vmatprep.subr.mxu0 %v6512_v16 }
 0x1d5   :  { %4028 = vmatprep.subr.mxu1 %v7393_v0  ;;  %3948 = vmatpush3.msra.mxu0 %v6521_v58  ;;  %v1896_v0 = vpop.permute.xlu0 %1895 }
 0x1d6   :  { %4029 = vmatpush3.msra.mxu1 %v6083_v32  ;;  %3949 = vmatprep.subr.mxu0 %v6532_v15  ;;  %v7421_v32 = vand.u32 4294901760, %v7397_v60 }
 0x1d7   :  { %4030 = vmatprep.subr.mxu1 %v6092_v11  ;;  %3950 = vmatpush3.msra.mxu0 %v6538_v57  ;;  %v7422_v11 = vand.u32 4294901760, %v7398_v54 }
 0x1d8   :  { %4031 = vmatpush3.msra.mxu1 %v6094_v18  ;;  %3237 = vmatmul.mubr.f32.vlgmr.msra.gmra.mxu0 %v6586_v13  ;;  %v7423_v18 = vand.u32 4294901760, %v7399_v43  ;;  %v7440_v13 = vld [vmem:[#allocation17_spill] sm:$0xff] }
 0x1d9   :  { %3989 = vmatprep.subr.mxu0 %v7418_v25  ;;  %4032 = vmatprep.subr.mxu1 %v6117_v5  ;;  %v7424_v5 = vand.u32 4294901760, %v7400_v41 }
 0x1da   :  { %3990 = vmatpush3.msra.mxu0 %v7419_v31  ;;  %3511 = vmatprep.mubr.f32.mxu0 %v6588_v63  ;;  %v7446_v63 = vld [vmem:[#allocation34_spill] sm:$0xff] }
 0x1db   :  { %4033 = vmatpush3.msra.mxu1 %v6133_v35  ;;  %3991 = vmatprep.subr.mxu0 %v7420_v14  ;;  %v7425_v35 = vand.u32 4294901760, %v7401_v39 }
 0x1dc   :  { %4034 = vmatprep.subr.mxu1 %v6150_v36  ;;  %3992 = vmatpush3.msra.mxu0 %v7421_v32  ;;  %v7426_v36 = vand.u32 4294901760, %v7402_v30 }
 0x1dd   :  { %4035 = vmatpush3.msra.mxu1 %v6167_v3  ;;  %3993 = vmatprep.subr.mxu0 %v7422_v11  ;;  %v7427_v3 = vand.u32 4294901760, %v7403_v22 }
 0x1de   :  { %4036 = vmatprep.subr.mxu1 %v6184_v28  ;;  %3994 = vmatpush3.msra.mxu0 %v7423_v18  ;;  %v7428_v28 = vand.u32 4294901760, %v7404_v1 }
 0x1df   :  { %4037 = vmatpush3.msra.mxu1 %v6197_v17  ;;  %3995 = vmatprep.subr.mxu0 %v7424_v5  ;;  %v7429_v17 = vand.u32 4294901760, %v7405_v33 }
 0x1e0   :  { %4038 = vmatprep.subr.mxu1 %v6207_v40  ;;  %3996 = vmatpush3.msra.mxu0 %v7425_v35  ;;  %v7431_v40 = vand.u32 4294901760, %v7407_v24 }
 0x1e1   :  { %4039 = vmatpush3.msra.mxu1 %v6224_v46  ;;  %3997 = vmatprep.subr.mxu0 %v7426_v36  ;;  %v7430_v46 = vand.u32 4294901760, %v7406_v8 }
 0x1e2   :  { %4040 = vmatprep.subr.mxu1 %v6254_v2  ;;  %3998 = vmatpush3.msra.mxu0 %v7427_v3  ;;  %v7433_v2 = vand.u32 4294901760, %v7409_v51 }
 0x1e3   :  { %4041 = vmatpush3.msra.mxu1 %v6284_v21  ;;  %3999 = vmatprep.subr.mxu0 %v7428_v28  ;;  %v7432_v21 = vand.u32 4294901760, %v7408_v45 }
 0x1e4   :  { %4042 = vmatprep.subr.mxu1 %v6296_v56  ;;  %4000 = vmatpush3.msra.mxu0 %v7429_v17  ;;  %v7435_v56 = vld [vmem:[#allocation22_spill] sm:$0xff] }
 0x1e5   :  { %4043 = vmatpush3.msra.mxu1 %v6343_v20  ;;  %4001 = vmatprep.subr.mxu0 %v7430_v46  ;;  %v7434_v20 = vand.u32 4294901760, %v7410_v53 }
 0x1e6   :  { %4044 = vmatprep.subr.mxu1 %v6362_v27  ;;  %4002 = vmatpush3.msra.mxu0 %v7431_v40  ;;  %v7436_v27 = vand.u32 4294901760, %v7411_v34  ;;  %v7442_v34 = vand.u32 4294901760, %v7414_v7 }
 0x1e7   :  { %4045 = vmatpush3.msra.mxu1 %v6373_v42  ;;  %4003 = vmatprep.subr.mxu0 %v7432_v21  ;;  %v7438_v42 = vand.u32 4294901760, %v7412_v26  ;;  %v7443_v26 = vand.u32 4294901760, %v7415_v59  ;;  %v7449_v59 = vand.u32 4294901760, %v6501_v44 }
 0x1e8   :  { %4046 = vmatprep.subr.mxu1 %v6386_v4  ;;  %4004 = vmatpush3.msra.mxu0 %v7433_v2  ;;  %v7439_v4 = vand.u32 4294901760, %v7413_v23 }
 0x1e9   :  { %4047 = vmatpush3.msra.mxu1 %v6388_v37  ;;  %4005 = vmatprep.subr.mxu0 %v7434_v20  ;;  %v7441_v37 = vand.u32 4294901760, %v6413_v38  ;;  %v7445_v38 = vand.u32 4294901760, %v6472_v50  ;;  %v7453_v50 = vand.u32 4294901760, %v6538_v57 }
 0x1ea   :  { %4048 = vmatprep.subr.mxu1 %v7435_v56  ;;  %4006 = vmatpush3.msra.mxu0 %v7436_v27 }
 0x1eb   :  { %4049 = vmatpush3.msra.mxu1 %v7437_v9  ;;  %4007 = vmatprep.subr.mxu0 %v7438_v42 }
 0x1ec   :  { %4050 = vmatprep.subr.mxu1 %v6445_v48  ;;  %4008 = vmatpush3.msra.mxu0 %v7439_v4  ;;  %v7444_v48 = vand.u32 4294901760, %v7416_v62  ;;  %v7451_v62 = vand.u32 4294901760, %v6521_v58 }
 0x1ed   :  { %4051 = vmatpush3.msra.mxu1 %v7440_v13  ;;  %4009 = vmatprep.subr.mxu0 %v7441_v37 }
 0x1ee   :  { %4052 = vmatprep.subr.mxu1 %v6474_v10  ;;  %4010 = vmatpush3.msra.mxu0 %v7442_v34  ;;  %v7447_v10 = vand.u32 4294901760, %v6483_v6 }
 0x1ef   :  { %4053 = vmatpush3.msra.mxu1 %v6485_v29  ;;  %4011 = vmatprep.subr.mxu0 %v7443_v26  ;;  %v7448_v29 = vand.u32 4294901760, %v6491_v19 }
 0x1f0   :  { %4054 = vmatprep.subr.mxu1 %v6493_v12  ;;  %4012 = vmatpush3.msra.mxu0 %v7444_v48  ;;  %v7450_v12 = vand.u32 4294901760, %v6512_v16 }
 0x1f1   :  { %4055 = vmatpush3.msra.mxu1 %v6503_v49  ;;  %4013 = vmatprep.subr.mxu0 %v7445_v38  ;;  %v7452_v49 = vand.u32 4294901760, %v6532_v15 }
 0x1f2   :  { %3617 = vmatmul.mubr.f32.vlgmr.msra.gmra.mxu1 %v7446_v63  ;;  %4014 = vmatpush3.msra.mxu0 %v7447_v10 }
 0x1f3   :  { %4015 = vmatprep.subr.mxu0 %v7448_v29 }
 0x1f4   :  { %4016 = vmatpush3.msra.mxu0 %v7449_v59 }
 0x1f5   :  { %4017 = vmatprep.subr.mxu0 %v7450_v12 }
 0x1f6   :  { %4018 = vmatpush3.msra.mxu0 %v7451_v62 }
 0x1f7   :  { %4019 = vmatprep.subr.mxu0 %v7452_v49 }
 0x1f8   :  { %4020 = vmatpush3.msra.mxu0 %v7453_v50 }
 0x1f9   :  { %3513 = vmatmul.mubr.f32.vlgmr.msra.gmra.mxu0 %v7446_v63 }
 0x205   :  { %v3706_v19 = vpop.f32.mrf.mxu1 }
 0x207   :  { %v3707_v61 = vpop.f32.mrf.mxu1 }
 0x208   :  { %v3708_v55 = vadd.f32 %v3707_v61, %v3706_v19 }
 0x20d   :  { %v3671_v6 = vpop.f32.mrf.mxu0 }
 0x20f   :  { %v3672_v7 = vpop.f32.mrf.mxu0 }
 0x210   :  { %v3673_v44 = vadd.f32 %v3672_v7, %v3671_v6 }
 0x212   :  { %v2007_v52 = vadd.f32 %v3673_v44, %v1896_v0 }
 0x214   :  { %v2239_v54 = vadd.f32 %v3708_v55, %v2007_v52 }
 0x226   :  { %v3776_v16 = vpop.f32.mrf.mxu1 }
 0x228   :  { %v3777_v15 = vpop.f32.mrf.mxu1 }
 0x229   :  { %v3778_v30 = vadd.f32 %v3777_v15, %v3776_v16 }
 0x22e   :  { %v3741_v23 = vpop.f32.mrf.mxu0 }
 0x230   :  { %v3742_v47 = vpop.f32.mrf.mxu0 }
 0x231   :  { %v3743_v60 = vadd.f32 %v3742_v47, %v3741_v23 }
 0x233   :  { %v2377_v41 = vadd.f32 %v3743_v60, %v2239_v54 }
 0x235   :  { %v2485_v33 = vadd.f32 %v3778_v30, %v2377_v41 }
 0x248   :  { %v3846_v43 = vpop.f32.mrf.mxu1 }
 0x24a   :  { %v3847_v1 = vpop.f32.mrf.mxu1 }
 0x24b   :  { %v3848_v53 = vadd.f32 %v3847_v1, %v3846_v43 }
 0x255   :  { %v3811_v58 = vpop.f32.mrf.mxu0 }
 0x257   :  { %v3812_v57 = vpop.f32.mrf.mxu0 }
 0x258   :  { %v3813_v22 = vadd.f32 %v3812_v57, %v3811_v58 }
 0x25a   :  { %v2653_v45 = vadd.f32 %v3813_v22, %v2485_v33 }
 0x25c   :  { %v2757_v14 = vadd.f32 %v3848_v53, %v2653_v45 }
 0x26e   :  { %v3916_v8 = vpop.f32.mrf.mxu1 }
 0x270   :  { %v3917_v31 = vpop.f32.mrf.mxu1 }
 0x271   :  { %v3918_v5 = vadd.f32 %v3917_v31, %v3916_v8 }
 0x277   :  { %v3881_v39 = vpop.f32.mrf.mxu0 }
 0x279   :  { %v3882_v24 = vpop.f32.mrf.mxu0 }
 0x27a   :  { %v3883_v25 = vadd.f32 %v3882_v24, %v3881_v39 }
 0x27c   :  { %v2869_v18 = vadd.f32 %v3883_v25, %v2757_v14 }
 0x27e   :  { %v3101_v3 = vadd.f32 %v3918_v5, %v2869_v18 }
 0x290   :  { %v3986_v32 = vpop.f32.mrf.mxu1 }
 0x292   :  { %v3987_v36 = vpop.f32.mrf.mxu1 }
 0x293   :  { %v3988_v40 = vadd.f32 %v3987_v36, %v3986_v32 }
 0x298   :  { %v3951_v51 = vpop.f32.mrf.mxu0 }
 0x29a   :  { %v3952_v11 = vpop.f32.mrf.mxu0 }
 0x29b   :  { %v3953_v35 = vadd.f32 %v3952_v11, %v3951_v51 }
 0x29d   :  { %v3239_v17 = vadd.f32 %v3953_v35, %v3101_v3 }
 0x29f   :  { %v3347_v20 = vadd.f32 %v3988_v40, %v3239_v17 }
 0x2b2   :  { %v4056_v28 = vpop.f32.mrf.mxu1 }
 0x2b4   :  { %v4057_v21 = vpop.f32.mrf.mxu1 }
 0x2b5   :  { %v4058_v27 = vadd.f32 %v4057_v21, %v4056_v28 }
 0x2b9   :  { %v4021_v46 = vpop.f32.mrf.mxu0 }
 0x2bb   :  { %v4022_v2 = vpop.f32.mrf.mxu0 }
 0x2bc   :  { %v4023_v56 = vadd.f32 %v4022_v2, %v4021_v46 }
 0x2be   :  { %v3515_v9 = vadd.f32 %v4023_v56, %v3347_v20 }
 0x2c0   :  { %v3619_v42 = vadd.f32 %v4058_v27, %v3515_v9 }
 0x2c2   :  { %3623 = vst.msk [vmem:[#allocation3] sm:$0xff] %vm3622_vm0, %v3619_v42 }
 0x2c3   :  { %4074 = shalt.err (!%p4071_p4)
}
 0x2c4   :  { %3633 = dma.vmem_to_hbm [thread:$0]  %s3631_s30, 128, %s6780_s5, [#allocation4]  }
 0x2c5   :  { %4083 = dma.done.wait [#allocation4], 128  }
 0x2c6   :  { %4084 = vsyncadd [#allocation4], 4294967168 }
 0x2c7   :  { %3637 = vsyncpa [#allocation4], 1 }

</bundles_post_ra>
